<compile_context>
chip_gen: v7x
topology: tpu7x:2x2x1
jax: 0.10.0
libtpu: 0.0.40
codegen_flags: <defaults>
</compile_context>

<pallas_src>
import functools

import jax
import jax.numpy as jnp
import numpy as np
from jax import lax
from jax.experimental import pallas as pl
from jax.experimental.pallas import tpu as pltpu

KS = 4            # conv kernel size
STRIDE = 2
PAD = 1
LRELU_SLOPE = 0.2
LANE = 128


def _round_up(x, m):
    return (x + m - 1) // m * m


# ----------------------------- Pallas kernel -----------------------------
def _conv_block_kernel(x_ref, w_ref, b_ref, o_ref, *, toh, ow):
    """One (batch, output-row-block) tile of conv4x4/s2/p1 + bias + LeakyReLU(0.2).

    x_ref: (1, 1, toh+1, WP2, 4C) bf16  s2d rows [r*toh, r*toh+toh] (halo row included)
    w_ref: (4, 4C, OCp)           bf16  weights grouped by (dh, dw) window-offset quadrant
    b_ref: (1, OCp)               f32   bias, zero-padded lanes
    o_ref: (1, toh*OW, OCp)       bf16  output tile, lane-dense (OCp % 128 == 0)
    """
    c4 = x_ref.shape[-1]
    ocp = o_ref.shape[-1]

    acc = jnp.zeros((toh * ow, ocp), jnp.float32)
    for dh in range(2):
        for dw in range(2):
            # The (dh, dw) quadrant of the 4x4 window: all 4 row/col parities x C channels are
            # already packed along the lane dim by the space-to-depth prep, so this is a
            # direct bf16 slice -> reshape -> MXU GEMM with f32 accumulation.
            # TODO(synk): on v6e/v7x the dw=1 view could use pltpu.roll (XLU) to avoid the
            # odd-sublane bf16 repack, and small-4C layers could fuse dw pairs into one K=8C GEMM.
            lhs = x_ref[0, 0, dh:dh + toh, dw:dw + ow, :].reshape(toh * ow, c4)
            acc += jnp.dot(lhs, w_ref[2 * dh + dw],
                           preferred_element_type=jnp.float32)

    y = acc + b_ref[...]                                  # f32 epilogue (no bf16 VPU ops)
    y = jnp.where(y >= 0, y, LRELU_SLOPE * y)             # LeakyReLU(0.2)
    o_ref[0] = y.astype(o_ref.dtype)


# --------------------------- tiling / pallas_call --------------------------
def _default_vmem_limit_bytes():
    cap = 64 * 1024 * 1024                       # conservative default (v7x per-TC VMEM)
    try:
        cap = int(pltpu.get_tpu_info().vmem_capacity_bytes)
    except Exception:
        pass
    # 64 MiB on 128-MiB parts (v5e/v6e); ~48 MiB on v7x so double-buffered inputs plus
    # compiler-internal scratch still fit inside the 64 MiB of physical VMEM.
    return min(64 * 1024 * 1024, cap * 3 // 4)


def _pick_row_block(oh, ow, c4, ocp, in_itemsize, vmem_budget, single_buf_consts):
    """Largest row block (need not divide OH) whose working set fits the VMEM budget,
    targeting ~512 GEMM rows per grid step, with the flat output tile sublane-aligned."""
    def vmem_est(toh):
        inp = 2 * (toh + 1) * (ow + 1) * c4 * in_itemsize              # window tile, dbl-buffered
        wgt = (1 if single_buf_consts else 2) * 4 * c4 * ocp * in_itemsize
        out = 2 * toh * ow * ocp * 2                                   # bf16 output, dbl-buffered
        work = toh * ow * (ocp * 4 + 2 * c4 * in_itemsize + ocp * 2)   # f32 acc + lhs + cast
        return inp + wgt + out + work

    target_rows = 512
    legal = sorted({d for d in range(1, oh + 1) if (d * ow) % 8 == 0} | {oh})
    fitting = [d for d in legal if vmem_est(d) <= vmem_budget]
    if fitting:
        under = [d for d in fitting if d * ow <= target_rows]
        return max(under) if under else min(fitting)
    return min(legal)          # nothing fits the estimate: smallest legal tile is our best shot


def _split_row_windows(x_s2d, toh, num_rb):
    """(N, OH+1, WP2, 4C) -> overlapping row windows (N, num_rb, toh+1, WP2, 4C).
    Window r covers s2d rows [r*toh, r*toh + toh]; only one row per block is duplicated."""
    n, hs, wp2, c4 = x_s2d.shape
    need = num_rb * toh + 1
    if need > hs:                                         # ragged last block: zero-pad rows
        x_s2d = jnp.pad(x_s2d, ((0, 0), (0, need - hs), (0, 0), (0, 0)))
    row_idx = jnp.arange(num_rb)[:, None] * toh + jnp.arange(toh + 1)[None, :]
    return x_s2d[:, row_idx]


def _const_specs(c4, ocp, single_buf):
    """BlockSpecs for the grid-invariant weight / bias operands."""
    if single_buf:
        return [pl.BlockSpec((4, c4, ocp), lambda b, r: (0, 0, 0),
                             pipeline_mode=pl.Buffered(1)),
                pl.BlockSpec((1, ocp), lambda b, r: (0, 0),
                             pipeline_mode=pl.Buffered(1))]
    return [pl.BlockSpec((4, c4, ocp), lambda b, r: (0, 0, 0)),
            pl.BlockSpec((1, ocp), lambda b, r: (0, 0))]


def _conv4x4s2_lrelu_call(x_s2d, w_mat, bias, oh, ow, *, vmem_limit_bytes,
                          out_dtype=jnp.bfloat16):
    """x_s2d: (N, OH+1, WP2, 4C) bf16; w_mat: (4, 4C, OCp) bf16; bias: (1, OCp) f32.
    Returns a lane-dense flat output slab (N, num_rb*toh*OW, OCp) in out_dtype."""
    n, _, wp2, c4 = x_s2d.shape
    ocp = w_mat.shape[-1]
    single_buf = hasattr(pl, "Buffered")

    toh = _pick_row_block(oh, ow, c4, ocp, x_s2d.dtype.itemsize,
                          int(vmem_limit_bytes * 0.7), single_buf)
    num_rb = -(-oh // toh)
    x_win = _split_row_windows(x_s2d, toh, num_rb)        # (N, num_rb, toh+1, WP2, 4C)

    kernel = functools.partial(_conv_block_kernel, toh=toh, ow=ow)

    c = c4 // 4
    flops = 2 * n * oh * ow * (KS * KS * c) * ocp
    bytes_accessed = (x_win.size * x_win.dtype.itemsize
                      + w_mat.size * w_mat.dtype.itemsize
                      + n * num_rb * toh * ow * ocp * jnp.dtype(out_dtype).itemsize)

    x_spec = pl.BlockSpec((1, 1, toh + 1, wp2, c4), lambda b, r: (b, r, 0, 0, 0))
    out_spec = pl.BlockSpec((1, toh * ow, ocp), lambda b, r: (b, r, 0))

    def run(use_single_buf):
        return pl.pallas_call(
            kernel,
            out_shape=jax.ShapeDtypeStruct((n, num_rb * toh * ow, ocp), out_dtype),
            grid_spec=pltpu.PrefetchScalarGridSpec(
                num_scalar_prefetch=0,
                grid=(n, num_rb),
                in_specs=[x_spec] + _const_specs(c4, ocp, use_single_buf),
                out_specs=out_spec,
            ),
            compiler_params=pltpu.CompilerParams(
                dimension_semantics=("parallel", "parallel"),
                vmem_limit_bytes=int(vmem_limit_bytes),
            ),
            cost_estimate=pl.CostEstimate(flops=int(flops), transcendentals=0,
                                          bytes_accessed=int(bytes_accessed)),
        )(x_win, w_mat, bias)

    if single_buf:
        try:
            return run(True)
        except Exception:
            pass   # pipeline_mode=pl.Buffered(1) rejected by this JAX; use default buffering.
    return run(False)


# ------------------------------ JAX glue ---------------------------------
def spectral_normalize(w, u0, n_power_iterations=1, eps=1e-12):
    """torch.nn.utils.spectral_norm forward-time weight normalization (1 power iteration)."""
    oc = w.shape[0]
    w_mat = w.reshape(oc, -1)

    def _l2n(v):
        return v / jnp.maximum(jnp.linalg.norm(v), eps)

    u = _l2n(u0)
    v = None
    for _ in range(n_power_iterations):
        v = _l2n(w_mat.T @ u)
        u = _l2n(w_mat @ v)
    sigma = u @ (w_mat @ v)
    # TODO(synk): torch persists the updated `u` buffer in-place (train mode); thread the
    # returned `u` back into the next call to replicate that statefulness exactly.
    return w / sigma, u


def _space_to_depth_pad(x_nchw, pad):
    """NCHW -> zero-padded NHWC -> stride-2 space-to-depth: (N, OH+1, OW+1, 4*C).
    Channel order of the result: (row_parity*2 + col_parity)*C + c."""
    n, c, h, w = x_nchw.shape
    x = jnp.transpose(x_nchw, (0, 2, 3, 1))
    x = jnp.pad(x, ((0, 0), (pad, pad), (pad, pad), (0, 0)))
    hp2, wp2 = (h + 2 * pad) // 2, (w + 2 * pad) // 2
    x = x.reshape(n, hp2, 2, wp2, 2, c)
    x = jnp.transpose(x, (0, 1, 3, 2, 4, 5))
    return x.reshape(n, hp2, wp2, 4 * c)


def discriminator_block_forward(x, w, b, u0, *, compute_dtype=jnp.bfloat16,
                                vmem_limit_bytes=None):
    """x: NCHW f32. spectral_norm(Conv2d k=4,s=2,p=1,bias)) -> Identity -> LeakyReLU(0.2).
    Returns (out [N,OC,OH,OW] in compute_dtype, spectrally-normalized weight, updated u)."""
    n, c, h, w_sp = x.shape
    oc = w.shape[0]
    assert w.shape == (oc, c, KS, KS)
    assert h % 2 == 0 and w_sp % 2 == 0, "k=4,s=2,p=1 conv expects even H/W"
    oh, ow = h // 2, w_sp // 2
    ocp = _round_up(oc, LANE)
    if vmem_limit_bytes is None:
        vmem_limit_bytes = _default_vmem_limit_bytes()

    w_sn, u_new = spectral_normalize(w, u0)

    # One-time layout prep (plain XLA, no HBM im2col duplication).
    # TODO(synk): for lane-sparse first layers (4C << 128) consider zero-padding the 4C dim to
    # 128 here (weights padded to match) for lane-dense DMAs when not input-bandwidth-bound.
    x_s2d = _space_to_depth_pad(x, PAD).astype(compute_dtype)           # (N, OH+1, OW+1, 4C)

    # Weights grouped by the 2x2 window-offset quadrant (dh, dw); within each group the
    # contraction dim is ordered (row_parity, col_parity, c) to match the s2d input.
    w_r = jnp.transpose(w_sn, (2, 3, 1, 0)).reshape(2, 2, 2, 2, c, oc)   # (dh,p,dw,q,C,OC)
    w_r = jnp.transpose(w_r, (0, 2, 1, 3, 4, 5)).reshape(4, 4 * c, oc)   # (dh*2+dw, 4C, OC)
    w_mat = jnp.pad(w_r, ((0, 0), (0, 0), (0, ocp - oc))).astype(compute_dtype)
    bias = jnp.pad(b.astype(jnp.float32), (0, ocp - oc)).reshape(1, ocp)

    out_flat = _conv4x4s2_lrelu_call(x_s2d, w_mat, bias, oh, ow,
                                     vmem_limit_bytes=vmem_limit_bytes,
                                     out_dtype=compute_dtype)            # (N, RB*toh*OW, OCp)
    oh_pad = out_flat.shape[1] // ow
    # TODO(synk): in a stacked discriminator keep the lane-dense bf16 NHWC/OCp slab end-to-end;
    # NCHW is only restored here to mirror the PyTorch module interface.
    out = out_flat.reshape(n, oh_pad, ow, ocp)[:, :oh, :, :oc].transpose(0, 3, 1, 2)
    return out, w_sn, u_new


# ------------------------------- reference -------------------------------
def _reference(x, w_sn, b):
    """Conv in f32 on bf16-rounded operands (matches the kernel's compute precision)."""
    xc = x.astype(jnp.bfloat16).astype(jnp.float32)
    wc = w_sn.astype(jnp.bfloat16).astype(jnp.float32)
    y = lax.conv_general_dilated(
        xc, wc, window_strides=(STRIDE, STRIDE), padding=((PAD, PAD), (PAD, PAD)),
        dimension_numbers=("NCHW", "OIHW", "NCHW"),
        preferred_element_type=jnp.float32)
    y = y + b.reshape(1, -1, 1, 1).astype(jnp.float32)
    return jnp.where(y >= 0, y, LRELU_SLOPE * y)


if __name__ == "__main__":
    key = jax.random.PRNGKey(0)
    k_x, k_w, k_b, k_u = jax.random.split(key, 4)

    N, C_IN, C_OUT, H, W = 2, 4, 8, 16, 16

    x = jax.random.normal(k_x, (N, C_IN, H, W), dtype=jnp.float32)
    # Same parameter shapes as nn.Conv2d(4, 8, 4, 2, 1, bias=True) (+ spectral-norm u).
    fan_in = C_IN * KS * KS
    bound = 1.0 / np.sqrt(fan_in)
    w = jax.random.uniform(k_w, (C_OUT, C_IN, KS, KS), jnp.float32, -bound, bound)
    b = jax.random.uniform(k_b, (C_OUT,), jnp.float32, -bound, bound)
    u0 = jax.random.normal(k_u, (C_OUT,), dtype=jnp.float32)

    # Called eagerly so the Buffered(1) feature-detect fallback can catch compile errors here.
    out, w_sn, _ = discriminator_block_forward(x, w, b, u0)
    out = jax.block_until_ready(out)

    ref = _reference(x, w_sn, b)
    np.testing.assert_allclose(np.asarray(out.astype(jnp.float32)), np.asarray(ref),
                               rtol=2e-2, atol=2e-2)
    assert out.shape == (N, C_OUT, H // 2, W // 2)

    print("KERNEL_OK")
</pallas_src>

<mosaic_0001>
module attributes {stable_mosaic.version = 11 : i64} {
  func.func @_conv_block_kernel(%arg0: i32, %arg1: i32, %arg2: memref<1x1x9x9x16xbf16, #tpu.memory_space<vmem>>, %arg3: memref<4x16x128xbf16, #tpu.memory_space<vmem>>, %arg4: memref<1x128xf32, #tpu.memory_space<vmem>>, %arg5: memref<1x64x128xbf16, #tpu.memory_space<vmem>>) attributes {dimension_semantics = [#tpu.dimension_semantics<parallel>, #tpu.dimension_semantics<parallel>], iteration_bounds = array<i64: 2, 1>, scalar_prefetch = 0 : i64, scratch_operands = 0 : i64, tpu.core_type = #tpu.core_type<tc>, window_params = [{transform_indices = @transform_0, window_bounds = array<i64: 1, 1, 9, 9, 16>}, {pipeline_mode = #tpu.pipeline_mode<synchronous>, transform_indices = @transform_1, window_bounds = array<i64: 4, 16, 128>}, {pipeline_mode = #tpu.pipeline_mode<synchronous>, transform_indices = @transform_2, window_bounds = array<i64: 1, 128>}, {transform_indices = @transform_3, window_bounds = array<i64: 1, 64, 128>}]} {
    %cst = arith.constant 0.000000e+00 : f32
    %0 = vector.broadcast %cst : f32 to vector<64x128xf32>
    %c0 = arith.constant 0 : index
    %c0_0 = arith.constant 0 : index
    %c0_1 = arith.constant 0 : index
    %c0_2 = arith.constant 0 : index
    %c0_3 = arith.constant 0 : index
    %1 = vector.load %arg2[%c0, %c0_0, %c0_1, %c0_2, %c0_3] : memref<1x1x9x9x16xbf16, #tpu.memory_space<vmem>>, vector<1x1x8x8x16xbf16>
    %2 = vector.shape_cast %1 : vector<1x1x8x8x16xbf16> to vector<8x8x16xbf16>
    %3 = vector.shape_cast %2 : vector<8x8x16xbf16> to vector<64x16xbf16>
    %c0_4 = arith.constant 0 : index
    %c0_5 = arith.constant 0 : index
    %c0_6 = arith.constant 0 : index
    %4 = vector.load %arg3[%c0_4, %c0_5, %c0_6] : memref<4x16x128xbf16, #tpu.memory_space<vmem>>, vector<1x16x128xbf16>
    %5 = vector.shape_cast %4 : vector<1x16x128xbf16> to vector<16x128xbf16>
    %cst_7 = arith.constant dense<0.000000e+00> : vector<64x128xf32>
    %6 = tpu.matmul %3, %5, %cst_7 {dimension_numbers = #tpu.dot_dimension_numbers<[1], [0], [0], [1], [0, 0, 1, 1], [], []>} : vector<64x16xbf16>, vector<16x128xbf16>, vector<64x128xf32> -> vector<64x128xf32>
    %7 = arith.addf %0, %6 : vector<64x128xf32>
    %c0_8 = arith.constant 0 : index
    %c0_9 = arith.constant 0 : index
    %c0_10 = arith.constant 0 : index
    %c1 = arith.constant 1 : index
    %c0_11 = arith.constant 0 : index
    %8 = vector.load %arg2[%c0_8, %c0_9, %c0_10, %c1, %c0_11] : memref<1x1x9x9x16xbf16, #tpu.memory_space<vmem>>, vector<1x1x8x8x16xbf16>
    %9 = vector.shape_cast %8 : vector<1x1x8x8x16xbf16> to vector<8x8x16xbf16>
    %10 = vector.shape_cast %9 : vector<8x8x16xbf16> to vector<64x16xbf16>
    %c1_12 = arith.constant 1 : index
    %c0_13 = arith.constant 0 : index
    %c0_14 = arith.constant 0 : index
    %11 = vector.load %arg3[%c1_12, %c0_13, %c0_14] : memref<4x16x128xbf16, #tpu.memory_space<vmem>>, vector<1x16x128xbf16>
    %12 = vector.shape_cast %11 : vector<1x16x128xbf16> to vector<16x128xbf16>
    %cst_15 = arith.constant dense<0.000000e+00> : vector<64x128xf32>
    %13 = tpu.matmul %10, %12, %cst_15 {dimension_numbers = #tpu.dot_dimension_numbers<[1], [0], [0], [1], [0, 0, 1, 1], [], []>} : vector<64x16xbf16>, vector<16x128xbf16>, vector<64x128xf32> -> vector<64x128xf32>
    %14 = arith.addf %7, %13 : vector<64x128xf32>
    %c0_16 = arith.constant 0 : index
    %c0_17 = arith.constant 0 : index
    %c1_18 = arith.constant 1 : index
    %c0_19 = arith.constant 0 : index
    %c0_20 = arith.constant 0 : index
    %15 = vector.load %arg2[%c0_16, %c0_17, %c1_18, %c0_19, %c0_20] : memref<1x1x9x9x16xbf16, #tpu.memory_space<vmem>>, vector<1x1x8x8x16xbf16>
    %16 = vector.shape_cast %15 : vector<1x1x8x8x16xbf16> to vector<8x8x16xbf16>
    %17 = vector.shape_cast %16 : vector<8x8x16xbf16> to vector<64x16xbf16>
    %c2 = arith.constant 2 : index
    %c0_21 = arith.constant 0 : index
    %c0_22 = arith.constant 0 : index
    %18 = vector.load %arg3[%c2, %c0_21, %c0_22] : memref<4x16x128xbf16, #tpu.memory_space<vmem>>, vector<1x16x128xbf16>
    %19 = vector.shape_cast %18 : vector<1x16x128xbf16> to vector<16x128xbf16>
    %cst_23 = arith.constant dense<0.000000e+00> : vector<64x128xf32>
    %20 = tpu.matmul %17, %19, %cst_23 {dimension_numbers = #tpu.dot_dimension_numbers<[1], [0], [0], [1], [0, 0, 1, 1], [], []>} : vector<64x16xbf16>, vector<16x128xbf16>, vector<64x128xf32> -> vector<64x128xf32>
    %21 = arith.addf %14, %20 : vector<64x128xf32>
    %c0_24 = arith.constant 0 : index
    %c0_25 = arith.constant 0 : index
    %c1_26 = arith.constant 1 : index
    %c1_27 = arith.constant 1 : index
    %c0_28 = arith.constant 0 : index
    %22 = vector.load %arg2[%c0_24, %c0_25, %c1_26, %c1_27, %c0_28] : memref<1x1x9x9x16xbf16, #tpu.memory_space<vmem>>, vector<1x1x8x8x16xbf16>
    %23 = vector.shape_cast %22 : vector<1x1x8x8x16xbf16> to vector<8x8x16xbf16>
    %24 = vector.shape_cast %23 : vector<8x8x16xbf16> to vector<64x16xbf16>
    %c3 = arith.constant 3 : index
    %c0_29 = arith.constant 0 : index
    %c0_30 = arith.constant 0 : index
    %25 = vector.load %arg3[%c3, %c0_29, %c0_30] : memref<4x16x128xbf16, #tpu.memory_space<vmem>>, vector<1x16x128xbf16>
    %26 = vector.shape_cast %25 : vector<1x16x128xbf16> to vector<16x128xbf16>
    %cst_31 = arith.constant dense<0.000000e+00> : vector<64x128xf32>
    %27 = tpu.matmul %24, %26, %cst_31 {dimension_numbers = #tpu.dot_dimension_numbers<[1], [0], [0], [1], [0, 0, 1, 1], [], []>} : vector<64x16xbf16>, vector<16x128xbf16>, vector<64x128xf32> -> vector<64x128xf32>
    %28 = arith.addf %21, %27 : vector<64x128xf32>
    %c0_32 = arith.constant 0 : index
    %c0_33 = arith.constant 0 : index
    %29 = vector.load %arg4[%c0_32, %c0_33] : memref<1x128xf32, #tpu.memory_space<vmem>>, vector<1x128xf32>
    %30 = vector.broadcast %29 : vector<1x128xf32> to vector<64x128xf32>
    %31 = arith.addf %28, %30 : vector<64x128xf32>
    %cst_34 = arith.constant 0.000000e+00 : f32
    %32 = vector.broadcast %cst_34 : f32 to vector<64x128xf32>
    %33 = arith.cmpf oge, %31, %32 : vector<64x128xf32>
    %cst_35 = arith.constant 2.000000e-01 : f32
    %34 = vector.broadcast %cst_35 : f32 to vector<64x128xf32>
    %35 = arith.mulf %34, %31 : vector<64x128xf32>
    %36 = arith.select %33, %31, %35 : vector<64x128xi1>, vector<64x128xf32>
    %37 = arith.truncf %36 : vector<64x128xf32> to vector<64x128xbf16>
    %c0_36 = arith.constant 0 : index
    %c0_37 = arith.constant 0 : index
    %c0_38 = arith.constant 0 : index
    %38 = vector.load %arg5[%c0_36, %c0_37, %c0_38] : memref<1x64x128xbf16, #tpu.memory_space<vmem>>, vector<1x64x128xbf16>
    %39 = vector.shape_cast %38 : vector<1x64x128xbf16> to vector<64x128xbf16>
    %40 = vector.shape_cast %37 : vector<64x128xbf16> to vector<1x64x128xbf16>
    tpu.vector_store %arg5[%c0_36, %c0_37, %c0_38], %40 {strides = array<i32>} : memref<1x64x128xbf16, #tpu.memory_space<vmem>>, vector<1x64x128xbf16>,
    return
  }
  func.func @transform_0(%arg0: i32, %arg1: i32) -> (i32, i32, i32, i32, i32) {
    %c0_i32 = arith.constant 0 : i32
    %c0_i32_0 = arith.constant 0 : i32
    %c0_i32_1 = arith.constant 0 : i32
    %c0_i32_2 = arith.constant 0 : i32
    return %arg0, %arg1, %c0_i32, %c0_i32_0, %c0_i32_1 : i32, i32, i32, i32, i32
  }
  func.func @transform_1(%arg0: i32, %arg1: i32) -> (i32, i32, i32) {
    %c0_i32 = arith.constant 0 : i32
    %c0_i32_0 = arith.constant 0 : i32
    %c0_i32_1 = arith.constant 0 : i32
    %c0_i32_2 = arith.constant 0 : i32
    return %c0_i32, %c0_i32_0, %c0_i32_1 : i32, i32, i32
  }
  func.func @transform_2(%arg0: i32, %arg1: i32) -> (i32, i32) {
    %c0_i32 = arith.constant 0 : i32
    %c0_i32_0 = arith.constant 0 : i32
    %c0_i32_1 = arith.constant 0 : i32
    return %c0_i32, %c0_i32_0 : i32, i32
  }
  func.func @transform_3(%arg0: i32, %arg1: i32) -> (i32, i32, i32) {
    %c0_i32 = arith.constant 0 : i32
    %c0_i32_0 = arith.constant 0 : i32
    return %arg0, %arg1, %c0_i32 : i32, i32, i32
  }
}

module attributes {stable_mosaic.version = 11 : i64} {
  func.func @_conv_block_kernel(%arg0: i32, %arg1: i32, %arg2: memref<1x1x9x9x16xbf16, #tpu.memory_space<vmem>>, %arg3: memref<4x16x128xbf16, #tpu.memory_space<vmem>>, %arg4: memref<1x128xf32, #tpu.memory_space<vmem>>, %arg5: memref<1x64x128xbf16, #tpu.memory_space<vmem>>) attributes {dimension_semantics = [#tpu.dimension_semantics<parallel>, #tpu.dimension_semantics<parallel>], iteration_bounds = array<i64: 2, 1>, scalar_prefetch = 0 : i64, scratch_operands = 0 : i64, tpu.core_type = #tpu.core_type<tc>, window_params = [{transform_indices = @transform_0, window_bounds = array<i64: 1, 1, 9, 9, 16>}, {pipeline_mode = #tpu.pipeline_mode<synchronous>, transform_indices = @transform_1, window_bounds = array<i64: 4, 16, 128>}, {pipeline_mode = #tpu.pipeline_mode<synchronous>, transform_indices = @transform_2, window_bounds = array<i64: 1, 128>}, {transform_indices = @transform_3, window_bounds = array<i64: 1, 64, 128>}]} {
    %cst = arith.constant 0.000000e+00 : f32
    %0 = vector.broadcast %cst : f32 to vector<64x128xf32>
    %c0 = arith.constant 0 : index
    %c0_0 = arith.constant 0 : index
    %c0_1 = arith.constant 0 : index
    %c0_2 = arith.constant 0 : index
    %c0_3 = arith.constant 0 : index
    %1 = vector.load %arg2[%c0, %c0_0, %c0_1, %c0_2, %c0_3] : memref<1x1x9x9x16xbf16, #tpu.memory_space<vmem>>, vector<1x1x8x8x16xbf16>
    %2 = vector.shape_cast %1 : vector<1x1x8x8x16xbf16> to vector<8x8x16xbf16>
    %3 = vector.shape_cast %2 : vector<8x8x16xbf16> to vector<64x16xbf16>
    %c0_4 = arith.constant 0 : index
    %c0_5 = arith.constant 0 : index
    %c0_6 = arith.constant 0 : index
    %4 = vector.load %arg3[%c0_4, %c0_5, %c0_6] : memref<4x16x128xbf16, #tpu.memory_space<vmem>>, vector<1x16x128xbf16>
    %5 = vector.shape_cast %4 : vector<1x16x128xbf16> to vector<16x128xbf16>
    %cst_7 = arith.constant dense<0.000000e+00> : vector<64x128xf32>
    %6 = tpu.matmul %3, %5, %cst_7 {dimension_numbers = #tpu.dot_dimension_numbers<[1], [0], [0], [1], [0, 0, 1, 1], [], []>} : vector<64x16xbf16>, vector<16x128xbf16>, vector<64x128xf32> -> vector<64x128xf32>
    %7 = arith.addf %0, %6 : vector<64x128xf32>
    %c0_8 = arith.constant 0 : index
    %c0_9 = arith.constant 0 : index
    %c0_10 = arith.constant 0 : index
    %c1 = arith.constant 1 : index
    %c0_11 = arith.constant 0 : index
    %8 = vector.load %arg2[%c0_8, %c0_9, %c0_10, %c1, %c0_11] : memref<1x1x9x9x16xbf16, #tpu.memory_space<vmem>>, vector<1x1x8x8x16xbf16>
    %9 = vector.shape_cast %8 : vector<1x1x8x8x16xbf16> to vector<8x8x16xbf16>
    %10 = vector.shape_cast %9 : vector<8x8x16xbf16> to vector<64x16xbf16>
    %c1_12 = arith.constant 1 : index
    %c0_13 = arith.constant 0 : index
    %c0_14 = arith.constant 0 : index
    %11 = vector.load %arg3[%c1_12, %c0_13, %c0_14] : memref<4x16x128xbf16, #tpu.memory_space<vmem>>, vector<1x16x128xbf16>
    %12 = vector.shape_cast %11 : vector<1x16x128xbf16> to vector<16x128xbf16>
    %cst_15 = arith.constant dense<0.000000e+00> : vector<64x128xf32>
    %13 = tpu.matmul %10, %12, %cst_15 {dimension_numbers = #tpu.dot_dimension_numbers<[1], [0], [0], [1], [0, 0, 1, 1], [], []>} : vector<64x16xbf16>, vector<16x128xbf16>, vector<64x128xf32> -> vector<64x128xf32>
    %14 = arith.addf %7, %13 : vector<64x128xf32>
    %c0_16 = arith.constant 0 : index
    %c0_17 = arith.constant 0 : index
    %c1_18 = arith.constant 1 : index
    %c0_19 = arith.constant 0 : index
    %c0_20 = arith.constant 0 : index
    %15 = vector.load %arg2[%c0_16, %c0_17, %c1_18, %c0_19, %c0_20] : memref<1x1x9x9x16xbf16, #tpu.memory_space<vmem>>, vector<1x1x8x8x16xbf16>
    %16 = vector.shape_cast %15 : vector<1x1x8x8x16xbf16> to vector<8x8x16xbf16>
    %17 = vector.shape_cast %16 : vector<8x8x16xbf16> to vector<64x16xbf16>
    %c2 = arith.constant 2 : index
    %c0_21 = arith.constant 0 : index
    %c0_22 = arith.constant 0 : index
    %18 = vector.load %arg3[%c2, %c0_21, %c0_22] : memref<4x16x128xbf16, #tpu.memory_space<vmem>>, vector<1x16x128xbf16>
    %19 = vector.shape_cast %18 : vector<1x16x128xbf16> to vector<16x128xbf16>
    %cst_23 = arith.constant dense<0.000000e+00> : vector<64x128xf32>
    %20 = tpu.matmul %17, %19, %cst_23 {dimension_numbers = #tpu.dot_dimension_numbers<[1], [0], [0], [1], [0, 0, 1, 1], [], []>} : vector<64x16xbf16>, vector<16x128xbf16>, vector<64x128xf32> -> vector<64x128xf32>
    %21 = arith.addf %14, %20 : vector<64x128xf32>
    %c0_24 = arith.constant 0 : index
    %c0_25 = arith.constant 0 : index
    %c1_26 = arith.constant 1 : index
    %c1_27 = arith.constant 1 : index
    %c0_28 = arith.constant 0 : index
    %22 = vector.load %arg2[%c0_24, %c0_25, %c1_26, %c1_27, %c0_28] : memref<1x1x9x9x16xbf16, #tpu.memory_space<vmem>>, vector<1x1x8x8x16xbf16>
    %23 = vector.shape_cast %22 : vector<1x1x8x8x16xbf16> to vector<8x8x16xbf16>
    %24 = vector.shape_cast %23 : vector<8x8x16xbf16> to vector<64x16xbf16>
    %c3 = arith.constant 3 : index
    %c0_29 = arith.constant 0 : index
    %c0_30 = arith.constant 0 : index
    %25 = vector.load %arg3[%c3, %c0_29, %c0_30] : memref<4x16x128xbf16, #tpu.memory_space<vmem>>, vector<1x16x128xbf16>
    %26 = vector.shape_cast %25 : vector<1x16x128xbf16> to vector<16x128xbf16>
    %cst_31 = arith.constant dense<0.000000e+00> : vector<64x128xf32>
    %27 = tpu.matmul %24, %26, %cst_31 {dimension_numbers = #tpu.dot_dimension_numbers<[1], [0], [0], [1], [0, 0, 1, 1], [], []>} : vector<64x16xbf16>, vector<16x128xbf16>, vector<64x128xf32> -> vector<64x128xf32>
    %28 = arith.addf %21, %27 : vector<64x128xf32>
    %c0_32 = arith.constant 0 : index
    %c0_33 = arith.constant 0 : index
    %29 = vector.load %arg4[%c0_32, %c0_33] : memref<1x128xf32, #tpu.memory_space<vmem>>, vector<1x128xf32>
    %30 = vector.broadcast %29 : vector<1x128xf32> to vector<64x128xf32>
    %31 = arith.addf %28, %30 : vector<64x128xf32>
    %cst_34 = arith.constant 0.000000e+00 : f32
    %32 = vector.broadcast %cst_34 : f32 to vector<64x128xf32>
    %33 = arith.cmpf oge, %31, %32 : vector<64x128xf32>
    %cst_35 = arith.constant 2.000000e-01 : f32
    %34 = vector.broadcast %cst_35 : f32 to vector<64x128xf32>
    %35 = arith.mulf %34, %31 : vector<64x128xf32>
    %36 = arith.select %33, %31, %35 : vector<64x128xi1>, vector<64x128xf32>
    %37 = arith.truncf %36 : vector<64x128xf32> to vector<64x128xbf16>
    %c0_36 = arith.constant 0 : index
    %c0_37 = arith.constant 0 : index
    %c0_38 = arith.constant 0 : index
    %38 = vector.load %arg5[%c0_36, %c0_37, %c0_38] : memref<1x64x128xbf16, #tpu.memory_space<vmem>>, vector<1x64x128xbf16>
    %39 = vector.shape_cast %38 : vector<1x64x128xbf16> to vector<64x128xbf16>
    %40 = vector.shape_cast %37 : vector<64x128xbf16> to vector<1x64x128xbf16>
    tpu.vector_store %arg5[%c0_36, %c0_37, %c0_38], %40 {strides = array<i32>} : memref<1x64x128xbf16, #tpu.memory_space<vmem>>, vector<1x64x128xbf16>,
    return
  }
  func.func @transform_0(%arg0: i32, %arg1: i32) -> (i32, i32, i32, i32, i32) {
    %c0_i32 = arith.constant 0 : i32
    %c0_i32_0 = arith.constant 0 : i32
    %c0_i32_1 = arith.constant 0 : i32
    %c0_i32_2 = arith.constant 0 : i32
    return %arg0, %arg1, %c0_i32, %c0_i32_0, %c0_i32_1 : i32, i32, i32, i32, i32
  }
  func.func @transform_1(%arg0: i32, %arg1: i32) -> (i32, i32, i32) {
    %c0_i32 = arith.constant 0 : i32
    %c0_i32_0 = arith.constant 0 : i32
    %c0_i32_1 = arith.constant 0 : i32
    %c0_i32_2 = arith.constant 0 : i32
    return %c0_i32, %c0_i32_0, %c0_i32_1 : i32, i32, i32
  }
  func.func @transform_2(%arg0: i32, %arg1: i32) -> (i32, i32) {
    %c0_i32 = arith.constant 0 : i32
    %c0_i32_0 = arith.constant 0 : i32
    %c0_i32_1 = arith.constant 0 : i32
    return %c0_i32, %c0_i32_0 : i32, i32
  }
  func.func @transform_3(%arg0: i32, %arg1: i32) -> (i32, i32, i32) {
    %c0_i32 = arith.constant 0 : i32
    %c0_i32_0 = arith.constant 0 : i32
    return %arg0, %arg1, %c0_i32 : i32, i32, i32
  }
}

</mosaic_0001>

<bundles_post_ra>
// kernel: tpu_custom_call.1
= control target key start
LH: loop header
LB: loop body
LE: loop exit
PB: predicated region body
PF: predicated region fallthrough
CT: control target
= control target key end

     0   :  { %8 = vsyncpa [#allocation3], 0  ;;  %s1714_s0 = inlined_call_operand.vmem [shape: bf16[2,1,9,9,16], index: 0, kind: input, shape index: {}]   ;;  %s1715_s1 = inlined_call_operand.vmem [shape: bf16[4,16,128], index: 1, kind: input, shape index: {}]   ;;  %s1716_s2 = inlined_call_operand.vmem [shape: f32[1,128], index: 2, kind: input, shape index: {}]   ;;  %s1717_s3 = inlined_call_operand.hbm [shape: bf16[2,64,128], index: 3, kind: output, shape index: {}]  }
   0x1   :  { %10 = vsyncpa [#allocation3 + $0x1], 0  ;;  %s1444_s12 = smov 0   ;;  %s1446_s13 = smov 0  }
   0x2   :  { %s1448_s14 = smov 0   ;;  %s1450_s15 = smov 0  }
   0x3   :  { %s1452_s16 = smov 0   ;;  %s1454_s17 = smov 0  }
   0x4 LB: > { %s1068_s18 = sadd.s32 4294967295, %s1419_s17   ;;  %s1069_s19 = sadd.s32 4294967294, %s1419_s17   ;;  %s1419_s17 = sphi %s1454_s17, %s16_s17   ;;  %s1415_s16 = sphi %s1452_s16, %s1726_s16   ;;  %s1411_s15 = sphi %s1450_s15, %s1725_s15   ;;  %s1407_s14 = sphi %s1448_s14, %s1724_s14   ;;  %s1403_s13 = sphi %s1446_s13, %s1723_s13   ;;  %s1399_s12 = sphi %s1444_s12, %s1722_s12  }
   0x5   : > { %s28_s20 = sadd.s32 1, %s1415_s16  ;;  %s107_s21 = sadd.s32 1, %s1407_s14 }
   0x6   : > { %p30_p0 = scmp.ge.s32.totalorder %s28_s20, 2  ;;  %p117_p1 = scmp.ne.s32.totalorder %s1407_s14, %s1403_s13 }
   0x7   : > { %p118_p2 = scmp.eq.s32.totalorder %s1068_s18, 1  ;;  %p123_p3 = scmp.ne.s32.totalorder %s1403_s13, %s1399_s12 }
   0x8   : > { %s1728_s20 = smov (%p30_p0, %s28_s20), 0  ;;  %p124_p5 = scmp.eq.s32.totalorder %s1069_s19, 1 }
   0x9   : > { %p1484_p4 = por %p118_p2, %p117_p1  ;;  %s102_s23 = ssub.s32 %s1415_s16, %s1728_s20 }
   0xa   : > { %p1072_p6 = scmp.ge.s32.totalorder %s1419_s17, 1  ;;  %p105_p7 = scmp.eq.s32.totalorder %s102_s23, 0 }
   0xb   : > { %p1491_p8 = por %p124_p5, %p123_p3  ;;  %p160_p9 = scmp.lt.s32.totalorder %s1419_s17, 3 }
   0xc   : > { %s1497_s25 = scalar_select %p105_p7, %s1407_s14, %s107_s21  }
   0xd   : > { %p161_p10 = pnand %p1072_p6, %p160_p9 }
   0xe   : > { %v1329_v0 = vld [vmem:[%s1715_s1 + $0x10] sm:$0xff] (!%p161_p10)   ;;  %p188_p11 = scmp.lt.s32.totalorder (!%p161_p10), %s1411_s15, 1  ;;  %v1332_v1 = vld [vmem:[%s1715_s1 + $0x8] sm:$0xff] (!%p161_p10)   ;;  %v1510_v2 = vld [vmem:[%s1715_s1] sm:$0xff] (!%p161_p10)   ;;  %vm353_vm0 = vcmask (!%p161_p10), 130048   ;;  %s185_s21 = sand.u32 (!%p161_p10), 1, %s1403_s13  }
   0xf   : > { %164 = sbr.rel (%p161_p10) target bundleno = 321 (0x141), region = 32  ;;  %1227 = vmatprep.subr.bf16.mxu0 (!%p161_p10), %v1329_v0  ;;  %1207 = vmatprep.subr.bf16.mxu1 (!%p161_p10), %v1332_v1  ;;  %v1336_v3 = vld [vmem:[%s1715_s1 + $0x18] sm:$0xff] (!%p161_p10)   ;;  %vm217_vm1 = vsmask.f32 (!%p161_p10), 3328  ;;  %vm218_vm2 = vsmask.f32 (!%p161_p10), 7440 }
  0x10   : > { %1228 = vmatpush3.bf16.msra.mxu0 (!%p161_p10), %v1329_v0  ;;  %1208 = vmatpush3.bf16.msra.mxu1 (!%p161_p10), %v1332_v1  ;;  %vm1552_vm3 = vmor (!%p161_p10), %vm217_vm1, %vm218_vm2  ;;  %v1141_v31 = vld [vmem:[%s1716_s2] ss:$0 sm:$0xff] (!%p161_p10)  ;;  %s1073_s23 = sshll.u32 (!%p161_p10), %s185_s21, 5  ;;  %s1163_s27 = sshll.u32 (!%p161_p10), %s1411_s15, 9 }
  0x11   : > { %1217 = vmatprep.subr.bf16.mxu1 (!%p161_p10), %v1510_v2  ;;  %1237 = vmatprep.subr.bf16.mxu0 (!%p161_p10), %v1336_v3  ;;  %s187_s26 = scalar_lea.vmem (!%p161_p10), [#allocation2], %s1073_s23  ;;  %s1662_s4 = scalar_lea.hbm (!%p161_p10), %s1717_s3, %s1163_s27 }
  0x12   : > { %s986_s28 = sshll.u32 (!%p161_p10), %s187_s26, 4  ;;  %s1664_s28 = int_to_ptr.vmem [resolvable:$true] %s986_s28 }
  0x13   : > { %s1341_s5 = scalar_lea.vmem (!%p161_p10), %s1664_s28, 512 }
  0x14   : > { %p1342_p12 = scmp.ne.s32.totalorder (!%p161_p10), %s1664_s28, %s1341_s5 }
  0x16   : > { %s189_s30 = scalar_select %p188_p11, %s1411_s15, 1 }
  0x17   : > { %s1668_s15 = scalar_lea.sflag [#allocation3], %s185_s21  ;;  %p1343_p13 = pnand %p1342_p12, %p1484_p4 }
  0x18   : > { %s1271_s6 = smul.u32 72, %s189_s30 }
  0x19   : > { %p1344_p0 = pneg %p1343_p13 }
  0x1a   : > { %s1519_s11 = scalar_lea.vmem %s1714_s0, %s1271_s6  ;;  %s1421_s6 = smov [#allocation2]  }
  0x1b   : > { %v1330_v4 = vld [vmem:[%s1519_s11 + $0x8] ss:$8 sps:$4 sm:$0xff]   ;;  %v1331_v5 = vld [vmem:[%s1519_s11 + $0x18] ss:$8 sps:$4 sm:$0xff]   ;;  %v209_v9 = vld [vmem:[%s1519_s11 + $0x4] sm:$0x1] }
  0x1c   : > { %1229 = vmatprep.mubr.msk.bf16.mxu0 %vm353_vm0, %v1330_v4  ;;  %v1333_v6 = vld [vmem:[%s1519_s11 + $0x28] ss:$8 sps:$4 sm:$0xff]   ;;  %v1527_v7 = vld [vmem:[%s1519_s11] sm:$0xf]  ;;  %v210_v10 = vld [vmem:[%s1519_s11 + $0xc] sm:$0x1] }
  0x1d   : > { %1230 = vmatmul.mubr.msk.bf16.vlgmr.msra.gmra.mrb[0].mxu0 %vm353_vm0, %v1331_v5  ;;  %v1530_v8 = vld [vmem:[%s1519_s11 + $0x8] sm:$0xf]  ;;  %v221_v11 = vshrl.u32 %v1527_v7, 16  ;;  %v224_v12 = vshll.u32 %v1527_v7, 16  ;;  %v230_v13 = vshll.u32 %v209_v9, 16  ;;  %v244_v16 = vshll.u32 %v210_v10, 16 }
  0x1e   : > { %1233 = vmatprep.mubr.msk.bf16.mxu0 %vm353_vm0, %v1333_v6  ;;  %v235_v14 = vshrl.u32 %v1530_v8, 16  ;;  %1238 = vmatpush3.bf16.msra.mxu0 %v1336_v3  ;;  %v238_v15 = vshll.u32 %v1530_v8, 16  ;;  %v1335_v21 = vld [vmem:[%s1519_s11 + $0x38] ss:$8 sps:$4 sm:$0xff]   ;;  %v1541_v24 = vld [vmem:[%s1519_s11 + $0x10] sm:$0xf] }
  0x1f   : > { %v223_v17 = vrot.slane %v221_v11, 4  ;;  %v226_v18 = vrot.slane %v224_v12, 5  ;;  %v232_v19 = vrot.slane %v230_v13, 5  ;;  %v246_v23 = vrot.slane %v244_v16, 5  ;;  %v1544_v25 = vld [vmem:[%s1519_s11 + $0x18] sm:$0xf] }
  0x20   : > { %v237_v20 = vrot.slane %v235_v14, 4  ;;  %v240_v22 = vrot.slane %v238_v15, 5  ;;  %v211_v27 = vld [vmem:[%s1519_s11 + $0x14] sm:$0x1]  ;;  %v212_v28 = vld [vmem:[%s1519_s11 + $0x1c] sm:$0x1] }
  0x21   : > { %v227_v26 = vor.u32 %v226_v18, %v223_v17  ;;  %v249_v29 = vshrl.u32 %v1541_v24, 16  ;;  %v252_v30 = vshll.u32 %v1541_v24, 16  ;;  %v258_v33 = vshll.u32 %v211_v27, 16  ;;  %v1114_v36 = vld [vmem:[%s1519_s11 + $0x8] sm:$0xf]  ;;  %s1345_s7 = sshll.u32 %s1421_s6, 4  ;;  %s1346_s7 = int_to_ptr.vmem [resolvable:$false] %s1345_s7 }
  0x22   : > { %v241_v32 = vor.u32 %v240_v22, %v237_v20  ;;  %v263_v34 = vshrl.u32 %v1544_v25, 16  ;;  %v266_v35 = vshll.u32 %v1544_v25, 16  ;;  %v272_v40 = vshll.u32 %v212_v28, 16  ;;  %v1115_v41 = vld [vmem:[%s1519_s11 + $0xc] sm:$0x1]  ;;  %s1347_s8 = scalar_lea.vmem %s1346_s7, 1024  ;;  %p1348_p1 = scmp.lt.s32.totalorder %s1664_s28, %s1346_s7 }
  0x23   : > { %v228_v37 = vrot.slane %v227_v26, 4  ;;  %v251_v38 = vrot.slane %v249_v29, 4  ;;  %v254_v39 = vrot.slane %v252_v30, 5  ;;  %v260_v43 = vrot.slane %v258_v33, 5  ;;  %v1116_v46 = vld [vmem:[%s1519_s11 + $0x10] sm:$0xf]  ;;  %p1349_p2 = scmp.lt.s32.totalorder %s1347_s8, %s1341_s5 }
  0x24   : > { %v242_v42 = vrot.slane %v241_v32, 4  ;;  %v265_v44 = vrot.slane %v263_v34, 4  ;;  %v268_v45 = vrot.slane %v266_v35, 5  ;;  %v274_v49 = vrot.slane %v272_v40, 5  ;;  %v1117_v53 = vld [vmem:[%s1519_s11 + $0x14] sm:$0x1] }
  0x25   : > { %1234 = vmatmul.mubr.msk.bf16.gmra.mrb[4].mxu0 %vm353_vm0, %v1335_v21  ;;  %v233_v47 = vsel %vm1552_vm3, %v228_v37, %v232_v19  ;;  %v255_v48 = vor.u32 %v254_v39, %v251_v38  ;;  %v674_v50 = vshrl.u32 %v1114_v36, 16  ;;  %v677_v54 = vshll.u32 %v1114_v36, 16  ;;  %v1568_v56 = vld [vmem:[%s1519_s11 + $0x20] sm:$0xf]  ;;  %v213_v1 = vld [vmem:[%s1519_s11 + $0x24] sm:$0x1]  ;;  %p1350_p3 = por %p1349_p2, %p1348_p1 }
  0x26   : > { %v247_v51 = vsel %vm1552_vm3, %v242_v42, %v246_v23  ;;  %v269_v52 = vor.u32 %v268_v45, %v265_v44  ;;  %v683_v55 = vshll.u32 %v1115_v41, 16  ;;  %v688_v60 = vshrl.u32 %v1116_v46, 16  ;;  %v1575_v6 = vld [vmem:[%s1519_s11 + $0x28] sm:$0xf]  ;;  %v214_v13 = vld [vmem:[%s1519_s11 + $0x2c] sm:$0x1] }
  0x27   : > { %v1077_v57 = vcombine.low %v233_v47, %v247_v51  ;;  %v256_v58 = vrot.slane %v255_v48, 4  ;;  %v676_v59 = vrot.slane %v674_v50, 4  ;;  %v679_v62 = vrot.slane %v677_v54, 5  ;;  %v1118_v15 = vld [vmem:[%s1519_s11 + $0x18] sm:$0xf]  ;;  %p1351_p5 = pnand %p1350_p3, %p1344_p0 }
  0x28   : > { %v270_v61 = vrot.slane %v269_v52, 4  ;;  %v685_v63 = vrot.slane %v683_v55, 5  ;;  %v691_v0 = vshll.u32 %v1116_v46, 16  ;;  %v690_v4 = vrot.slane %v688_v60, 4  ;;  %v1119_v26 = vld [vmem:[%s1519_s11 + $0x1c] sm:$0x1] }
  0x29   : > { %1209 = vmatprep.mubr.msk.bf16.mxu1 %vm353_vm0, %v1077_v57  ;;  %v261_v3 = vsel %vm1552_vm3, %v256_v58, %v260_v43  ;;  %v697_v5 = vshll.u32 %v1117_v53, 16  ;;  %v277_v9 = vshrl.u32 %v1568_v56, 16  ;;  %v680_v11 = vor.u32 %v679_v62, %v676_v59  ;;  %v1120_v30 = vld [vmem:[%s1519_s11 + $0x20] sm:$0xf]  ;;  %v1121_v39 = vld [vmem:[%s1519_s11 + $0x24] sm:$0x1] }
  0x2a   : > { %v275_v10 = vsel %vm1552_vm3, %v270_v61, %v274_v49  ;;  %v693_v12 = vrot.slane %v691_v0, 5  ;;  %v280_v14 = vshll.u32 %v1568_v56, 16  ;;  %v286_v19 = vshll.u32 %v213_v1, 16  ;;  %v1598_v50 = vld [vmem:[%s1519_s11 + $0x38] sm:$0xf] }
  0x2b   : > { %v1078_v16 = vcombine.low %v261_v3, %v275_v10  ;;  %v699_v17 = vrot.slane %v697_v5, 5  ;;  %v279_v18 = vrot.slane %v277_v9, 4  ;;  %v681_v20 = vrot.slane %v680_v11, 4  ;;  %v215_v51 = vld [vmem:[%s1519_s11 + $0x34] sm:$0x1] }
  0x2c   : > { %v694_v21 = vor.u32 %v693_v12, %v690_v4  ;;  %v282_v22 = vrot.slane %v280_v14, 5  ;;  %v291_v23 = vshrl.u32 %v1575_v6, 16  ;;  %v288_v27 = vrot.slane %v286_v19, 5  ;;  %v216_v62 = vld [vmem:[%s1519_s11 + $0x3c] sm:$0x1] }
  0x2d   : > { %1210 = vmatmul.mubr.msk.bf16.vlgmr.msra.gmra.mrb[0].mxu1 %vm353_vm0, %v1078_v16  ;;  %v294_v28 = vshll.u32 %v1575_v6, 16  ;;  %v300_v29 = vshll.u32 %v214_v13, 16  ;;  %v702_v32 = vshrl.u32 %v1118_v15, 16  ;;  %v686_v33 = vsel %vm1552_vm3, %v681_v20, %v685_v63  ;;  %v1122_v10 = vld [vmem:[%s1519_s11 + $0x28] sm:$0xf] }
  0x2e   : > { %1218 = vmatpush3.bf16.msra.mxu1 %v1510_v2  ;;  %v695_v34 = vrot.slane %v694_v21, 4  ;;  %v283_v35 = vor.u32 %v282_v22, %v279_v18  ;;  %v293_v36 = vrot.slane %v291_v23, 4  ;;  %v705_v41 = vshll.u32 %v1118_v15, 16  ;;  %v1595_v2 = vld [vmem:[%s1519_s11 + $0x30] sm:$0xf] }
  0x2f   : > { %v296_v37 = vrot.slane %v294_v28, 5  ;;  %v302_v38 = vrot.slane %v300_v29, 5  ;;  %v704_v40 = vrot.slane %v702_v32, 4  ;;  %v711_v44 = vshll.u32 %v1119_v26, 16  ;;  %v1123_v11 = vld [vmem:[%s1519_s11 + $0x2c] sm:$0x1] }
  0x30   : > { %v700_v42 = vsel %vm1552_vm3, %v695_v34, %v699_v17  ;;  %v284_v43 = vrot.slane %v283_v35, 4  ;;  %v716_v45 = vshrl.u32 %v1120_v30, 16  ;;  %v707_v48 = vrot.slane %v705_v41, 5  ;;  %v1124_v15 = vld [vmem:[%s1519_s11 + $0x30] sm:$0xf] }
  0x31   : > { %v1132_v46 = vcombine.low %v686_v33, %v700_v42  ;;  %v297_v47 = vor.u32 %v296_v37, %v293_v36  ;;  %v719_v49 = vshll.u32 %v1120_v30, 16  ;;  %v713_v53 = vrot.slane %v711_v44, 5  ;;  %v1125_v22 = vld [vmem:[%s1519_s11 + $0x34] sm:$0x1]  ;;  %v1126_v30 = vld [vmem:[%s1519_s11 + $0x38] sm:$0xf] }
  0x32   : > { %v289_v52 = vsel %vm1552_vm3, %v284_v43, %v288_v27  ;;  %v718_v54 = vrot.slane %v716_v45, 4  ;;  %v725_v55 = vshll.u32 %v1121_v39, 16  ;;  %v708_v58 = vor.u32 %v707_v48, %v704_v40  ;;  %v1127_v36 = vld [vmem:[%s1519_s11 + $0x3c] sm:$0x1]  ;;  %v1128_v41 = vld [vmem:[%s1519_s11 + $0x40] sm:$0xf] }
  0x33   : > { %1239 = vmatprep.mubr.msk.bf16.mxu0 %vm353_vm0, %v1132_v46  ;;  %v298_v57 = vrot.slane %v297_v47, 4  ;;  %v721_v59 = vrot.slane %v719_v49, 5  ;;  %v305_v60 = vshrl.u32 %v1595_v2, 16  ;;  %v308_v63 = vshll.u32 %v1595_v2, 16 }
  0x34   : > { %v727_v61 = vrot.slane %v725_v55, 5  ;;  %v314_v0 = vshll.u32 %v215_v51, 16  ;;  %v319_v1 = vshrl.u32 %v1598_v50, 16  ;;  %v709_v4 = vrot.slane %v708_v58, 4 }
  0x35   : > { %v303_v3 = vsel %vm1552_vm3, %v298_v57, %v302_v38  ;;  %v722_v5 = vor.u32 %v721_v59, %v718_v54  ;;  %v307_v9 = vrot.slane %v305_v60, 4  ;;  %v310_v13 = vrot.slane %v308_v63, 5 }
  0x36   : > { %v1079_v12 = vcombine.low %v289_v52, %v303_v3  ;;  %v321_v14 = vrot.slane %v319_v1, 4  ;;  %v1086_v16 = vcombine.low %v1527_v7, %v1530_v8  ;;  %v714_v17 = vsel %vm1552_vm3, %v709_v4, %v713_v53  ;;  %v1129_v52 = vld [vmem:[%s1519_s11 + $0x44] sm:$0x1] }
  0x37   : > { %v723_v18 = vrot.slane %v722_v5, 4  ;;  %v322_v19 = vshll.u32 %v1598_v50, 16  ;;  %v328_v20 = vshll.u32 %v216_v62, 16  ;;  %v311_v21 = vor.u32 %v310_v13, %v307_v9 }
  0x38   : > { %1213 = vmatprep.mubr.msk.bf16.mxu1 %vm353_vm0, %v1079_v12  ;;  %v730_v23 = vshrl.u32 %v1122_v10, 16  ;;  %v733_v26 = vshll.u32 %v1122_v10, 16  ;;  %v739_v27 = vshll.u32 %v1123_v11, 16  ;;  %v316_v7 = vrot.slane %v314_v0, 5 }
  0x39   : > { %v728_v28 = vsel %vm1552_vm3, %v723_v18, %v727_v61  ;;  %v324_v8 = vrot.slane %v322_v19, 5  ;;  %v744_v29 = vshrl.u32 %v1124_v15, 16  ;;  %v312_v33 = vrot.slane %v311_v21, 4 }
  0x3a   : > { %v1133_v32 = vcombine.low %v714_v17, %v728_v28  ;;  %v732_v34 = vrot.slane %v730_v23, 4  ;;  %v735_v35 = vrot.slane %v733_v26, 5  ;;  %v330_v38 = vrot.slane %v328_v20, 5 }
  0x3b   : > { %v325_v37 = vor.u32 %v324_v8, %v321_v14  ;;  %v746_v39 = vrot.slane %v744_v29, 4  ;;  %v747_v40 = vshll.u32 %v1124_v15, 16  ;;  %v741_v43 = vrot.slane %v739_v27, 5 }
  0x3c   : > { %1240 = vmatmul.mubr.msk.bf16.vlgmr.msra.gmra.mrb[0].mxu0 %vm353_vm0, %v1133_v32  ;;  %v736_v42 = vor.u32 %v735_v35, %v732_v34  ;;  %v753_v44 = vshll.u32 %v1125_v22, 16  ;;  %v758_v45 = vshrl.u32 %v1126_v30, 16  ;;  %v317_v46 = vsel %vm1552_vm3, %v312_v33, %v316_v7 }
  0x3d   : > { %v326_v47 = vrot.slane %v325_v37, 4  ;;  %v749_v48 = vrot.slane %v747_v40, 5  ;;  %v761_v49 = vshll.u32 %v1126_v30, 16  ;;  %v767_v54 = vshll.u32 %v1127_v36, 16 }
  0x3e   : > { %v737_v51 = vrot.slane %v736_v42, 4  ;;  %v760_v53 = vrot.slane %v758_v45, 4  ;;  %v772_v55 = vshrl.u32 %v1128_v41, 16  ;;  %v755_v59 = vrot.slane %v753_v44, 5 }
  0x3f   : > { %v331_v57 = vsel %vm1552_vm3, %v326_v47, %v330_v38  ;;  %v750_v58 = vor.u32 %v749_v48, %v746_v39  ;;  %v763_v60 = vrot.slane %v761_v49, 5  ;;  %v775_v63 = vshll.u32 %v1128_v41, 16 }
  0x40   : > { %v1080_v61 = vcombine.low %v317_v46, %v331_v57  ;;  %v774_v62 = vrot.slane %v772_v55, 4  ;;  %v742_v0 = vsel %vm1552_vm3, %v737_v51, %v741_v43  ;;  %v781_v4 = vshll.u32 %v1129_v52, 16 }
  0x41   : > { %v751_v1 = vrot.slane %v750_v58, 4  ;;  %v764_v3 = vor.u32 %v763_v60, %v760_v53  ;;  %v769_v5 = vrot.slane %v767_v54, 5  ;;  %v777_v9 = vrot.slane %v775_v63, 5 }
  0x42   : > { %1214 = vmatmul.mubr.msk.bf16.gmra.mrb[4].mxu1 %vm353_vm0, %v1080_v61  ;;  %v783_v14 = vrot.slane %v781_v4, 5  ;;  %v1087_v18 = vcombine.low %v1541_v24, %v1544_v25  ;;  %v1088_v19 = vcombine.low %v1568_v56, %v1575_v6  ;;  %v1089_v21 = vcombine.low %v1595_v2, %v1598_v50 }
  0x43   : > { %v756_v10 = vsel %vm1552_vm3, %v751_v1, %v755_v59  ;;  %1219 = vmatprep.mubr.msk.bf16.mxu1 %vm353_vm0, %v1086_v16  ;;  %v765_v11 = vrot.slane %v764_v3, 4  ;;  %v778_v13 = vor.u32 %v777_v9, %v774_v62 }
  0x44   : > { %v1134_v12 = vcombine.low %v742_v0, %v756_v10 }
  0x45   : > { %v770_v15 = vsel %vm1552_vm3, %v765_v11, %v769_v5  ;;  %v779_v17 = vrot.slane %v778_v13, 4 }
  0x46   : > { %1243 = vmatprep.mubr.msk.bf16.mxu0 %vm353_vm0, %v1134_v12 }
  0x47   : > { %v784_v20 = vsel %vm1552_vm3, %v779_v17, %v783_v14 }
  0x48   : > { %v1135_v16 = vcombine.low %v770_v15, %v784_v20 }
  0x4a   : > { %1220 = vmatmul.mubr.msk.bf16.vlgmr.msra.gmra.mrb[0].mxu1 %vm353_vm0, %v1087_v18  ;;  %1244 = vmatmul.mubr.msk.bf16.gmra.mrb[4].mxu0 %vm353_vm0, %v1135_v16 }
  0x4b   : > { %1223 = vmatprep.mubr.msk.bf16.mxu1 %vm353_vm0, %v1088_v19 }
  0x52   : > { %1224 = vmatmul.mubr.msk.bf16.gmra.mrb[4].mxu1 %vm353_vm0, %v1089_v21 }
 0x10f   : > { %v1241_v24 = vpop.f32.mrb[0].mxu0 }
 0x110   : > { %v852_v25 = vpop.f32.mrb[1].mxu0 }
 0x111   : > { %v1242_v22 = vpop.f32.mrb[2].mxu0 }
 0x112   : > { %v855_v56 = vpop.f32.mrb[3].mxu0 }
 0x11d   : > { %v1221_v6 = vpop.f32.mrb[0].mxu1  ;;  %v1245_v23 = vpop.f32.mrb[4].mxu0 }
 0x11e   : > { %v1247_v26 = vadd.f32 %v1241_v24, %v1221_v6  ;;  %v503_v27 = vpop.f32.mrb[1].mxu1  ;;  %v868_v28 = vpop.f32.mrb[5].mxu0 }
 0x11f   : > { %v1248_v7 = vadd.f32 %v852_v25, %v503_v27  ;;  %v1222_v8 = vpop.f32.mrb[2].mxu1  ;;  %v1246_v50 = vpop.f32.mrb[6].mxu0 }
 0x120   : > { %v900_v2 = vadd.f32 %v1247_v26, %v1141_v31  ;;  %v1249_v29 = vadd.f32 %v1242_v22, %v1222_v8  ;;  %v506_v30 = vpop.f32.mrb[3].mxu1  ;;  %v871_v33 = vpop.f32.mrb[7].mxu0 }
 0x121   : > { %v898_v32 = vadd.f32 %v1248_v7, %v1141_v31  ;;  %v1250_v34 = vadd.f32 %v855_v56, %v506_v30 }
 0x122   : > { %v916_v35 = vmul.f32 0.2, %v900_v2  ;;  %v901_v36 = vadd.f32 %v1249_v29, %v1141_v31  ;;  %vm908_vm4 = vcmp.ge.f32.partialorder %v900_v2, 0.0 }
 0x123   : > { %v914_v37 = vmul.f32 0.2, %v898_v32  ;;  %v899_v38 = vadd.f32 %v1250_v34, %v1141_v31  ;;  %vm906_vm5 = vcmp.ge.f32.partialorder %v898_v32, 0.0 }
 0x124   : > { %vm909_vm6 = vcmp.ge.f32.partialorder %v901_v36, 0.0  ;;  %v917_v39 = vmul.f32 0.2, %v901_v36  ;;  %v924_v42 = vsel %vm908_vm4, %v900_v2, %v916_v35 }
 0x125   : > { %vm907_vm7 = vcmp.ge.f32.partialorder %v899_v38, 0.0  ;;  %v915_v40 = vmul.f32 0.2, %v899_v38  ;;  %v1225_v41 = vpop.f32.mrb[4].mxu1  ;;  %v922_v46 = vsel %vm906_vm5, %v898_v32, %v914_v37 }
 0x126   : > { %v925_v43 = vsel %vm909_vm6, %v901_v36, %v917_v39  ;;  %v1251_v44 = vadd.f32 %v1245_v23, %v1225_v41  ;;  %v519_v45 = vpop.f32.mrb[5].mxu1 }
 0x127   : > { %v1172_v47 = vpack.c.bf16 %v925_v43, %v924_v42  ;;  %v923_v48 = vsel %vm907_vm7, %v899_v38, %v915_v40  ;;  %v1252_v49 = vadd.f32 %v868_v28, %v519_v45  ;;  %v1226_v51 = vpop.f32.mrb[6].mxu1 }
 0x128   : > { %v1167_v52 = vpack.c.bf16 %v923_v48, %v922_v46  ;;  %v904_v53 = vadd.f32 %v1251_v44, %v1141_v31  ;;  %v1253_v54 = vadd.f32 %v1246_v50, %v1226_v51  ;;  %v522_v55 = vpop.f32.mrb[7].mxu1 }
 0x129   : > { %1184 = vst [vmem:[%s187_s26 + $0x8] sm:$0xff] %v1172_v47   ;;  %v902_v57 = vadd.f32 %v1252_v49, %v1141_v31  ;;  %v1254_v58 = vadd.f32 %v871_v33, %v522_v55 }
 0x12a   : > { %1168 = vst [vmem:[%s187_s26] sm:$0xff] %v1167_v52   ;;  %v920_v59 = vmul.f32 0.2, %v904_v53  ;;  %v905_v60 = vadd.f32 %v1253_v54, %v1141_v31  ;;  %vm912_vm8 = vcmp.ge.f32.partialorder %v904_v53, 0.0 }
 0x12b   : > { %v918_v61 = vmul.f32 0.2, %v902_v57  ;;  %v903_v62 = vadd.f32 %v1254_v58, %v1141_v31  ;;  %vm910_vm9 = vcmp.ge.f32.partialorder %v902_v57, 0.0 }
 0x12c   : > { %vm913_vm10 = vcmp.ge.f32.partialorder %v905_v60, 0.0  ;;  %v921_v63 = vmul.f32 0.2, %v905_v60  ;;  %v928_v1 = vsel %vm912_vm8, %v904_v53, %v920_v59 }
 0x12d   : > { %vm911_vm11 = vcmp.ge.f32.partialorder %v903_v62, 0.0  ;;  %v919_v0 = vmul.f32 0.2, %v903_v62  ;;  %v926_v4 = vsel %vm910_vm9, %v902_v57, %v918_v61 }
 0x12e   : > { %v929_v3 = vsel %vm913_vm10, %v905_v60, %v921_v63 }
 0x12f   : > { %v1182_v5 = vpack.c.bf16 %v929_v3, %v928_v1  ;;  %v927_v9 = vsel %vm911_vm11, %v903_v62, %v919_v0 }
 0x130   : > { %v1177_v10 = vpack.c.bf16 %v927_v9, %v926_v4 }
 0x131   : > { %1186 = vst [vmem:[%s187_s26 + $0x18] sm:$0xff] %v1182_v5  }
 0x132   : > { %1185 = vst [vmem:[%s187_s26 + $0x10] sm:$0xff] %v1177_v10  }
 0x133   : > { %1354 = shalt.err (!%p1351_p5)
}
 0x134   : > { %s1355_s9 = scalar_lea.hbm %s1662_s4, 512  ;;  %s1359_s18 = scalar_lea.hbm %s1717_s3, 1024 }
 0x135   : > { %p1356_p6 = scmp.ne.s32.totalorder %s1662_s4, %s1355_s9  ;;  %p1360_p10 = scmp.lt.u32.totalorder %s1662_s4, %s1717_s3 }
 0x136   : > { %p1361_p11 = scmp.lt.u32.totalorder %s1359_s18, %s1355_s9  ;;  %p1363_p13 = scmp.lt.u32.totalorder %s1355_s9, %s1662_s4 }
 0x137   : > { %p1357_p7 = pnand %p1356_p6, %p1484_p4 }
 0x138   : > { %p1362_p12 = por %p1361_p11, %p1360_p10 }
 0x139   : > { %p1358_p9 = pneg %p1357_p7 }
 0x13a   : > { %p1364_p0 = por %p1363_p13, %p1362_p12 }
 0x13c   : > { %p1365_p1 = pnand %p1364_p0, %p1358_p9 }
 0x13e   : > { %1368 = shalt.err (!%p1365_p1)
}
 0x13f   : > { %s1422_s23 = smov 64   ;;  %s1423_s26 = smov 4  }
 0x140   : > { %1272 = dma.vmem_to_hbm [thread:$0]  (%p1484_p4), %s1664_s28, 512, %s1662_s4, %s1668_s15, %s1422_s23, %s1422_s23, %s1423_s26  }
 0x141 PF: > { %p1278_p2 = scmp.ge.s32.totalorder %s1419_s17, 2  ;;  %s1001_s27 = sand.u32 1, %s1399_s12  }
 0x142   : > { %s1002_s29 = scalar_lea.sflag [#allocation3], %s1001_s27 }
 0x143   : > { %p1275_p3 = pnand %p1278_p2, %p1491_p8 }
 0x145   : > { %1394 = dma.done.wait (!%p1275_p3), %s1002_s29, 512  }
 0x146   : > { %1396 = vsyncadd (!%p1275_p3), %s1002_s29, 4294966784  ;;  %s16_s17 = sadd.s32 1, %s1419_s17   ;;  %s1722_s12 = smov %s1403_s13 }
 0x147   : > { %p13_p5 = scmp.ge.s32.totalorder %s16_s17, 4   ;;  %s1723_s13 = smov %s1407_s14 }
 0x148   : > { %s1724_s14 = smov %s1497_s25  ;;  %s1725_s15 = smov %s1415_s16 }
 0x149   : > { %s1726_s16 = smov %s1728_s20  ;;  %15 = sbr.rel (!%p13_p5) target bundleno = 4 (0x4), region = 71 }
 0x150   :  { %1007 = vsyncpa [#allocation3], 1 }
 0x151   :  { %1009 = vsyncpa [#allocation3 + $0x1], 1 }

// kernel: tpu_custom_call.1
= control target key start
LH: loop header
LB: loop body
LE: loop exit
PB: predicated region body
PF: predicated region fallthrough
CT: control target
= control target key end

     0   :  { %8 = vsyncpa [#allocation3], 0  ;;  %s1714_s0 = inlined_call_operand.vmem [shape: bf16[2,1,9,9,16], index: 0, kind: input, shape index: {}]   ;;  %s1715_s1 = inlined_call_operand.vmem [shape: bf16[4,16,128], index: 1, kind: input, shape index: {}]   ;;  %s1716_s2 = inlined_call_operand.vmem [shape: f32[1,128], index: 2, kind: input, shape index: {}]   ;;  %s1717_s3 = inlined_call_operand.hbm [shape: bf16[2,64,128], index: 3, kind: output, shape index: {}]  }
   0x1   :  { %10 = vsyncpa [#allocation3 + $0x1], 0  ;;  %s1444_s12 = smov 0   ;;  %s1446_s13 = smov 0  }
   0x2   :  { %s1448_s14 = smov 0   ;;  %s1450_s15 = smov 0  }
   0x3   :  { %s1452_s16 = smov 0   ;;  %s1454_s17 = smov 0  }
   0x4 LB: > { %s1068_s18 = sadd.s32 4294967295, %s1419_s17   ;;  %s1069_s19 = sadd.s32 4294967294, %s1419_s17   ;;  %s1419_s17 = sphi %s1454_s17, %s16_s17   ;;  %s1415_s16 = sphi %s1452_s16, %s1726_s16   ;;  %s1411_s15 = sphi %s1450_s15, %s1725_s15   ;;  %s1407_s14 = sphi %s1448_s14, %s1724_s14   ;;  %s1403_s13 = sphi %s1446_s13, %s1723_s13   ;;  %s1399_s12 = sphi %s1444_s12, %s1722_s12  }
   0x5   : > { %s28_s20 = sadd.s32 1, %s1415_s16  ;;  %s107_s21 = sadd.s32 1, %s1407_s14 }
   0x6   : > { %p30_p0 = scmp.ge.s32.totalorder %s28_s20, 2  ;;  %p117_p1 = scmp.ne.s32.totalorder %s1407_s14, %s1403_s13 }
   0x7   : > { %p118_p2 = scmp.eq.s32.totalorder %s1068_s18, 1  ;;  %p123_p3 = scmp.ne.s32.totalorder %s1403_s13, %s1399_s12 }
   0x8   : > { %s1728_s20 = smov (%p30_p0, %s28_s20), 0  ;;  %p124_p5 = scmp.eq.s32.totalorder %s1069_s19, 1 }
   0x9   : > { %p1484_p4 = por %p118_p2, %p117_p1  ;;  %s102_s23 = ssub.s32 %s1415_s16, %s1728_s20 }
   0xa   : > { %p1072_p6 = scmp.ge.s32.totalorder %s1419_s17, 1  ;;  %p105_p7 = scmp.eq.s32.totalorder %s102_s23, 0 }
   0xb   : > { %p1491_p8 = por %p124_p5, %p123_p3  ;;  %p160_p9 = scmp.lt.s32.totalorder %s1419_s17, 3 }
   0xc   : > { %s1497_s25 = scalar_select %p105_p7, %s1407_s14, %s107_s21  }
   0xd   : > { %p161_p10 = pnand %p1072_p6, %p160_p9 }
   0xe   : > { %v1329_v0 = vld [vmem:[%s1715_s1 + $0x10] sm:$0xff] (!%p161_p10)   ;;  %p188_p11 = scmp.lt.s32.totalorder (!%p161_p10), %s1411_s15, 1  ;;  %v1332_v1 = vld [vmem:[%s1715_s1 + $0x8] sm:$0xff] (!%p161_p10)   ;;  %v1510_v2 = vld [vmem:[%s1715_s1] sm:$0xff] (!%p161_p10)   ;;  %vm353_vm0 = vcmask (!%p161_p10), 130048   ;;  %s185_s21 = sand.u32 (!%p161_p10), 1, %s1403_s13  }
   0xf   : > { %164 = sbr.rel (%p161_p10) target bundleno = 321 (0x141), region = 32  ;;  %1227 = vmatprep.subr.bf16.mxu0 (!%p161_p10), %v1329_v0  ;;  %1207 = vmatprep.subr.bf16.mxu1 (!%p161_p10), %v1332_v1  ;;  %v1336_v3 = vld [vmem:[%s1715_s1 + $0x18] sm:$0xff] (!%p161_p10)   ;;  %vm217_vm1 = vsmask.f32 (!%p161_p10), 3328  ;;  %vm218_vm2 = vsmask.f32 (!%p161_p10), 7440 }
  0x10   : > { %1228 = vmatpush3.bf16.msra.mxu0 (!%p161_p10), %v1329_v0  ;;  %1208 = vmatpush3.bf16.msra.mxu1 (!%p161_p10), %v1332_v1  ;;  %vm1552_vm3 = vmor (!%p161_p10), %vm217_vm1, %vm218_vm2  ;;  %v1141_v31 = vld [vmem:[%s1716_s2] ss:$0 sm:$0xff] (!%p161_p10)  ;;  %s1073_s23 = sshll.u32 (!%p161_p10), %s185_s21, 5  ;;  %s1163_s27 = sshll.u32 (!%p161_p10), %s1411_s15, 9 }
  0x11   : > { %1217 = vmatprep.subr.bf16.mxu1 (!%p161_p10), %v1510_v2  ;;  %1237 = vmatprep.subr.bf16.mxu0 (!%p161_p10), %v1336_v3  ;;  %s187_s26 = scalar_lea.vmem (!%p161_p10), [#allocation2], %s1073_s23  ;;  %s1662_s4 = scalar_lea.hbm (!%p161_p10), %s1717_s3, %s1163_s27 }
  0x12   : > { %s986_s28 = sshll.u32 (!%p161_p10), %s187_s26, 4  ;;  %s1664_s28 = int_to_ptr.vmem [resolvable:$true] %s986_s28 }
  0x13   : > { %s1341_s5 = scalar_lea.vmem (!%p161_p10), %s1664_s28, 512 }
  0x14   : > { %p1342_p12 = scmp.ne.s32.totalorder (!%p161_p10), %s1664_s28, %s1341_s5 }
  0x16   : > { %s189_s30 = scalar_select %p188_p11, %s1411_s15, 1 }
  0x17   : > { %s1668_s15 = scalar_lea.sflag [#allocation3], %s185_s21  ;;  %p1343_p13 = pnand %p1342_p12, %p1484_p4 }
  0x18   : > { %s1271_s6 = smul.u32 72, %s189_s30 }
  0x19   : > { %p1344_p0 = pneg %p1343_p13 }
  0x1a   : > { %s1519_s11 = scalar_lea.vmem %s1714_s0, %s1271_s6  ;;  %s1421_s6 = smov [#allocation2]  }
  0x1b   : > { %v1330_v4 = vld [vmem:[%s1519_s11 + $0x8] ss:$8 sps:$4 sm:$0xff]   ;;  %v1331_v5 = vld [vmem:[%s1519_s11 + $0x18] ss:$8 sps:$4 sm:$0xff]   ;;  %v209_v9 = vld [vmem:[%s1519_s11 + $0x4] sm:$0x1] }
  0x1c   : > { %1229 = vmatprep.mubr.msk.bf16.mxu0 %vm353_vm0, %v1330_v4  ;;  %v1333_v6 = vld [vmem:[%s1519_s11 + $0x28] ss:$8 sps:$4 sm:$0xff]   ;;  %v1527_v7 = vld [vmem:[%s1519_s11] sm:$0xf]  ;;  %v210_v10 = vld [vmem:[%s1519_s11 + $0xc] sm:$0x1] }
  0x1d   : > { %1230 = vmatmul.mubr.msk.bf16.vlgmr.msra.gmra.mrb[0].mxu0 %vm353_vm0, %v1331_v5  ;;  %v1530_v8 = vld [vmem:[%s1519_s11 + $0x8] sm:$0xf]  ;;  %v221_v11 = vshrl.u32 %v1527_v7, 16  ;;  %v224_v12 = vshll.u32 %v1527_v7, 16  ;;  %v230_v13 = vshll.u32 %v209_v9, 16  ;;  %v244_v16 = vshll.u32 %v210_v10, 16 }
  0x1e   : > { %1233 = vmatprep.mubr.msk.bf16.mxu0 %vm353_vm0, %v1333_v6  ;;  %v235_v14 = vshrl.u32 %v1530_v8, 16  ;;  %1238 = vmatpush3.bf16.msra.mxu0 %v1336_v3  ;;  %v238_v15 = vshll.u32 %v1530_v8, 16  ;;  %v1335_v21 = vld [vmem:[%s1519_s11 + $0x38] ss:$8 sps:$4 sm:$0xff]   ;;  %v1541_v24 = vld [vmem:[%s1519_s11 + $0x10] sm:$0xf] }
  0x1f   : > { %v223_v17 = vrot.slane %v221_v11, 4  ;;  %v226_v18 = vrot.slane %v224_v12, 5  ;;  %v232_v19 = vrot.slane %v230_v13, 5  ;;  %v246_v23 = vrot.slane %v244_v16, 5  ;;  %v1544_v25 = vld [vmem:[%s1519_s11 + $0x18] sm:$0xf] }
  0x20   : > { %v237_v20 = vrot.slane %v235_v14, 4  ;;  %v240_v22 = vrot.slane %v238_v15, 5  ;;  %v211_v27 = vld [vmem:[%s1519_s11 + $0x14] sm:$0x1]  ;;  %v212_v28 = vld [vmem:[%s1519_s11 + $0x1c] sm:$0x1] }
  0x21   : > { %v227_v26 = vor.u32 %v226_v18, %v223_v17  ;;  %v249_v29 = vshrl.u32 %v1541_v24, 16  ;;  %v252_v30 = vshll.u32 %v1541_v24, 16  ;;  %v258_v33 = vshll.u32 %v211_v27, 16  ;;  %v1114_v36 = vld [vmem:[%s1519_s11 + $0x8] sm:$0xf]  ;;  %s1345_s7 = sshll.u32 %s1421_s6, 4  ;;  %s1346_s7 = int_to_ptr.vmem [resolvable:$false] %s1345_s7 }
  0x22   : > { %v241_v32 = vor.u32 %v240_v22, %v237_v20  ;;  %v263_v34 = vshrl.u32 %v1544_v25, 16  ;;  %v266_v35 = vshll.u32 %v1544_v25, 16  ;;  %v272_v40 = vshll.u32 %v212_v28, 16  ;;  %v1115_v41 = vld [vmem:[%s1519_s11 + $0xc] sm:$0x1]  ;;  %s1347_s8 = scalar_lea.vmem %s1346_s7, 1024  ;;  %p1348_p1 = scmp.lt.s32.totalorder %s1664_s28, %s1346_s7 }
  0x23   : > { %v228_v37 = vrot.slane %v227_v26, 4  ;;  %v251_v38 = vrot.slane %v249_v29, 4  ;;  %v254_v39 = vrot.slane %v252_v30, 5  ;;  %v260_v43 = vrot.slane %v258_v33, 5  ;;  %v1116_v46 = vld [vmem:[%s1519_s11 + $0x10] sm:$0xf]  ;;  %p1349_p2 = scmp.lt.s32.totalorder %s1347_s8, %s1341_s5 }
  0x24   : > { %v242_v42 = vrot.slane %v241_v32, 4  ;;  %v265_v44 = vrot.slane %v263_v34, 4  ;;  %v268_v45 = vrot.slane %v266_v35, 5  ;;  %v274_v49 = vrot.slane %v272_v40, 5  ;;  %v1117_v53 = vld [vmem:[%s1519_s11 + $0x14] sm:$0x1] }
  0x25   : > { %1234 = vmatmul.mubr.msk.bf16.gmra.mrb[4].mxu0 %vm353_vm0, %v1335_v21  ;;  %v233_v47 = vsel %vm1552_vm3, %v228_v37, %v232_v19  ;;  %v255_v48 = vor.u32 %v254_v39, %v251_v38  ;;  %v674_v50 = vshrl.u32 %v1114_v36, 16  ;;  %v677_v54 = vshll.u32 %v1114_v36, 16  ;;  %v1568_v56 = vld [vmem:[%s1519_s11 + $0x20] sm:$0xf]  ;;  %v213_v1 = vld [vmem:[%s1519_s11 + $0x24] sm:$0x1]  ;;  %p1350_p3 = por %p1349_p2, %p1348_p1 }
  0x26   : > { %v247_v51 = vsel %vm1552_vm3, %v242_v42, %v246_v23  ;;  %v269_v52 = vor.u32 %v268_v45, %v265_v44  ;;  %v683_v55 = vshll.u32 %v1115_v41, 16  ;;  %v688_v60 = vshrl.u32 %v1116_v46, 16  ;;  %v1575_v6 = vld [vmem:[%s1519_s11 + $0x28] sm:$0xf]  ;;  %v214_v13 = vld [vmem:[%s1519_s11 + $0x2c] sm:$0x1] }
  0x27   : > { %v1077_v57 = vcombine.low %v233_v47, %v247_v51  ;;  %v256_v58 = vrot.slane %v255_v48, 4  ;;  %v676_v59 = vrot.slane %v674_v50, 4  ;;  %v679_v62 = vrot.slane %v677_v54, 5  ;;  %v1118_v15 = vld [vmem:[%s1519_s11 + $0x18] sm:$0xf]  ;;  %p1351_p5 = pnand %p1350_p3, %p1344_p0 }
  0x28   : > { %v270_v61 = vrot.slane %v269_v52, 4  ;;  %v685_v63 = vrot.slane %v683_v55, 5  ;;  %v691_v0 = vshll.u32 %v1116_v46, 16  ;;  %v690_v4 = vrot.slane %v688_v60, 4  ;;  %v1119_v26 = vld [vmem:[%s1519_s11 + $0x1c] sm:$0x1] }
  0x29   : > { %1209 = vmatprep.mubr.msk.bf16.mxu1 %vm353_vm0, %v1077_v57  ;;  %v261_v3 = vsel %vm1552_vm3, %v256_v58, %v260_v43  ;;  %v697_v5 = vshll.u32 %v1117_v53, 16  ;;  %v277_v9 = vshrl.u32 %v1568_v56, 16  ;;  %v680_v11 = vor.u32 %v679_v62, %v676_v59  ;;  %v1120_v30 = vld [vmem:[%s1519_s11 + $0x20] sm:$0xf]  ;;  %v1121_v39 = vld [vmem:[%s1519_s11 + $0x24] sm:$0x1] }
  0x2a   : > { %v275_v10 = vsel %vm1552_vm3, %v270_v61, %v274_v49  ;;  %v693_v12 = vrot.slane %v691_v0, 5  ;;  %v280_v14 = vshll.u32 %v1568_v56, 16  ;;  %v286_v19 = vshll.u32 %v213_v1, 16  ;;  %v1598_v50 = vld [vmem:[%s1519_s11 + $0x38] sm:$0xf] }
  0x2b   : > { %v1078_v16 = vcombine.low %v261_v3, %v275_v10  ;;  %v699_v17 = vrot.slane %v697_v5, 5  ;;  %v279_v18 = vrot.slane %v277_v9, 4  ;;  %v681_v20 = vrot.slane %v680_v11, 4  ;;  %v215_v51 = vld [vmem:[%s1519_s11 + $0x34] sm:$0x1] }
  0x2c   : > { %v694_v21 = vor.u32 %v693_v12, %v690_v4  ;;  %v282_v22 = vrot.slane %v280_v14, 5  ;;  %v291_v23 = vshrl.u32 %v1575_v6, 16  ;;  %v288_v27 = vrot.slane %v286_v19, 5  ;;  %v216_v62 = vld [vmem:[%s1519_s11 + $0x3c] sm:$0x1] }
  0x2d   : > { %1210 = vmatmul.mubr.msk.bf16.vlgmr.msra.gmra.mrb[0].mxu1 %vm353_vm0, %v1078_v16  ;;  %v294_v28 = vshll.u32 %v1575_v6, 16  ;;  %v300_v29 = vshll.u32 %v214_v13, 16  ;;  %v702_v32 = vshrl.u32 %v1118_v15, 16  ;;  %v686_v33 = vsel %vm1552_vm3, %v681_v20, %v685_v63  ;;  %v1122_v10 = vld [vmem:[%s1519_s11 + $0x28] sm:$0xf] }
  0x2e   : > { %1218 = vmatpush3.bf16.msra.mxu1 %v1510_v2  ;;  %v695_v34 = vrot.slane %v694_v21, 4  ;;  %v283_v35 = vor.u32 %v282_v22, %v279_v18  ;;  %v293_v36 = vrot.slane %v291_v23, 4  ;;  %v705_v41 = vshll.u32 %v1118_v15, 16  ;;  %v1595_v2 = vld [vmem:[%s1519_s11 + $0x30] sm:$0xf] }
  0x2f   : > { %v296_v37 = vrot.slane %v294_v28, 5  ;;  %v302_v38 = vrot.slane %v300_v29, 5  ;;  %v704_v40 = vrot.slane %v702_v32, 4  ;;  %v711_v44 = vshll.u32 %v1119_v26, 16  ;;  %v1123_v11 = vld [vmem:[%s1519_s11 + $0x2c] sm:$0x1] }
  0x30   : > { %v700_v42 = vsel %vm1552_vm3, %v695_v34, %v699_v17  ;;  %v284_v43 = vrot.slane %v283_v35, 4  ;;  %v716_v45 = vshrl.u32 %v1120_v30, 16  ;;  %v707_v48 = vrot.slane %v705_v41, 5  ;;  %v1124_v15 = vld [vmem:[%s1519_s11 + $0x30] sm:$0xf] }
  0x31   : > { %v1132_v46 = vcombine.low %v686_v33, %v700_v42  ;;  %v297_v47 = vor.u32 %v296_v37, %v293_v36  ;;  %v719_v49 = vshll.u32 %v1120_v30, 16  ;;  %v713_v53 = vrot.slane %v711_v44, 5  ;;  %v1125_v22 = vld [vmem:[%s1519_s11 + $0x34] sm:$0x1]  ;;  %v1126_v30 = vld [vmem:[%s1519_s11 + $0x38] sm:$0xf] }
  0x32   : > { %v289_v52 = vsel %vm1552_vm3, %v284_v43, %v288_v27  ;;  %v718_v54 = vrot.slane %v716_v45, 4  ;;  %v725_v55 = vshll.u32 %v1121_v39, 16  ;;  %v708_v58 = vor.u32 %v707_v48, %v704_v40  ;;  %v1127_v36 = vld [vmem:[%s1519_s11 + $0x3c] sm:$0x1]  ;;  %v1128_v41 = vld [vmem:[%s1519_s11 + $0x40] sm:$0xf] }
  0x33   : > { %1239 = vmatprep.mubr.msk.bf16.mxu0 %vm353_vm0, %v1132_v46  ;;  %v298_v57 = vrot.slane %v297_v47, 4  ;;  %v721_v59 = vrot.slane %v719_v49, 5  ;;  %v305_v60 = vshrl.u32 %v1595_v2, 16  ;;  %v308_v63 = vshll.u32 %v1595_v2, 16 }
  0x34   : > { %v727_v61 = vrot.slane %v725_v55, 5  ;;  %v314_v0 = vshll.u32 %v215_v51, 16  ;;  %v319_v1 = vshrl.u32 %v1598_v50, 16  ;;  %v709_v4 = vrot.slane %v708_v58, 4 }
  0x35   : > { %v303_v3 = vsel %vm1552_vm3, %v298_v57, %v302_v38  ;;  %v722_v5 = vor.u32 %v721_v59, %v718_v54  ;;  %v307_v9 = vrot.slane %v305_v60, 4  ;;  %v310_v13 = vrot.slane %v308_v63, 5 }
  0x36   : > { %v1079_v12 = vcombine.low %v289_v52, %v303_v3  ;;  %v321_v14 = vrot.slane %v319_v1, 4  ;;  %v1086_v16 = vcombine.low %v1527_v7, %v1530_v8  ;;  %v714_v17 = vsel %vm1552_vm3, %v709_v4, %v713_v53  ;;  %v1129_v52 = vld [vmem:[%s1519_s11 + $0x44] sm:$0x1] }
  0x37   : > { %v723_v18 = vrot.slane %v722_v5, 4  ;;  %v322_v19 = vshll.u32 %v1598_v50, 16  ;;  %v328_v20 = vshll.u32 %v216_v62, 16  ;;  %v311_v21 = vor.u32 %v310_v13, %v307_v9 }
  0x38   : > { %1213 = vmatprep.mubr.msk.bf16.mxu1 %vm353_vm0, %v1079_v12  ;;  %v730_v23 = vshrl.u32 %v1122_v10, 16  ;;  %v733_v26 = vshll.u32 %v1122_v10, 16  ;;  %v739_v27 = vshll.u32 %v1123_v11, 16  ;;  %v316_v7 = vrot.slane %v314_v0, 5 }
  0x39   : > { %v728_v28 = vsel %vm1552_vm3, %v723_v18, %v727_v61  ;;  %v324_v8 = vrot.slane %v322_v19, 5  ;;  %v744_v29 = vshrl.u32 %v1124_v15, 16  ;;  %v312_v33 = vrot.slane %v311_v21, 4 }
  0x3a   : > { %v1133_v32 = vcombine.low %v714_v17, %v728_v28  ;;  %v732_v34 = vrot.slane %v730_v23, 4  ;;  %v735_v35 = vrot.slane %v733_v26, 5  ;;  %v330_v38 = vrot.slane %v328_v20, 5 }
  0x3b   : > { %v325_v37 = vor.u32 %v324_v8, %v321_v14  ;;  %v746_v39 = vrot.slane %v744_v29, 4  ;;  %v747_v40 = vshll.u32 %v1124_v15, 16  ;;  %v741_v43 = vrot.slane %v739_v27, 5 }
  0x3c   : > { %1240 = vmatmul.mubr.msk.bf16.vlgmr.msra.gmra.mrb[0].mxu0 %vm353_vm0, %v1133_v32  ;;  %v736_v42 = vor.u32 %v735_v35, %v732_v34  ;;  %v753_v44 = vshll.u32 %v1125_v22, 16  ;;  %v758_v45 = vshrl.u32 %v1126_v30, 16  ;;  %v317_v46 = vsel %vm1552_vm3, %v312_v33, %v316_v7 }
  0x3d   : > { %v326_v47 = vrot.slane %v325_v37, 4  ;;  %v749_v48 = vrot.slane %v747_v40, 5  ;;  %v761_v49 = vshll.u32 %v1126_v30, 16  ;;  %v767_v54 = vshll.u32 %v1127_v36, 16 }
  0x3e   : > { %v737_v51 = vrot.slane %v736_v42, 4  ;;  %v760_v53 = vrot.slane %v758_v45, 4  ;;  %v772_v55 = vshrl.u32 %v1128_v41, 16  ;;  %v755_v59 = vrot.slane %v753_v44, 5 }
  0x3f   : > { %v331_v57 = vsel %vm1552_vm3, %v326_v47, %v330_v38  ;;  %v750_v58 = vor.u32 %v749_v48, %v746_v39  ;;  %v763_v60 = vrot.slane %v761_v49, 5  ;;  %v775_v63 = vshll.u32 %v1128_v41, 16 }
  0x40   : > { %v1080_v61 = vcombine.low %v317_v46, %v331_v57  ;;  %v774_v62 = vrot.slane %v772_v55, 4  ;;  %v742_v0 = vsel %vm1552_vm3, %v737_v51, %v741_v43  ;;  %v781_v4 = vshll.u32 %v1129_v52, 16 }
  0x41   : > { %v751_v1 = vrot.slane %v750_v58, 4  ;;  %v764_v3 = vor.u32 %v763_v60, %v760_v53  ;;  %v769_v5 = vrot.slane %v767_v54, 5  ;;  %v777_v9 = vrot.slane %v775_v63, 5 }
  0x42   : > { %1214 = vmatmul.mubr.msk.bf16.gmra.mrb[4].mxu1 %vm353_vm0, %v1080_v61  ;;  %v783_v14 = vrot.slane %v781_v4, 5  ;;  %v1087_v18 = vcombine.low %v1541_v24, %v1544_v25  ;;  %v1088_v19 = vcombine.low %v1568_v56, %v1575_v6  ;;  %v1089_v21 = vcombine.low %v1595_v2, %v1598_v50 }
  0x43   : > { %v756_v10 = vsel %vm1552_vm3, %v751_v1, %v755_v59  ;;  %1219 = vmatprep.mubr.msk.bf16.mxu1 %vm353_vm0, %v1086_v16  ;;  %v765_v11 = vrot.slane %v764_v3, 4  ;;  %v778_v13 = vor.u32 %v777_v9, %v774_v62 }
  0x44   : > { %v1134_v12 = vcombine.low %v742_v0, %v756_v10 }
  0x45   : > { %v770_v15 = vsel %vm1552_vm3, %v765_v11, %v769_v5  ;;  %v779_v17 = vrot.slane %v778_v13, 4 }
  0x46   : > { %1243 = vmatprep.mubr.msk.bf16.mxu0 %vm353_vm0, %v1134_v12 }
  0x47   : > { %v784_v20 = vsel %vm1552_vm3, %v779_v17, %v783_v14 }
  0x48   : > { %v1135_v16 = vcombine.low %v770_v15, %v784_v20 }
  0x4a   : > { %1220 = vmatmul.mubr.msk.bf16.vlgmr.msra.gmra.mrb[0].mxu1 %vm353_vm0, %v1087_v18  ;;  %1244 = vmatmul.mubr.msk.bf16.gmra.mrb[4].mxu0 %vm353_vm0, %v1135_v16 }
  0x4b   : > { %1223 = vmatprep.mubr.msk.bf16.mxu1 %vm353_vm0, %v1088_v19 }
  0x52   : > { %1224 = vmatmul.mubr.msk.bf16.gmra.mrb[4].mxu1 %vm353_vm0, %v1089_v21 }
 0x10f   : > { %v1241_v24 = vpop.f32.mrb[0].mxu0 }
 0x110   : > { %v852_v25 = vpop.f32.mrb[1].mxu0 }
 0x111   : > { %v1242_v22 = vpop.f32.mrb[2].mxu0 }
 0x112   : > { %v855_v56 = vpop.f32.mrb[3].mxu0 }
 0x11d   : > { %v1221_v6 = vpop.f32.mrb[0].mxu1  ;;  %v1245_v23 = vpop.f32.mrb[4].mxu0 }
 0x11e   : > { %v1247_v26 = vadd.f32 %v1241_v24, %v1221_v6  ;;  %v503_v27 = vpop.f32.mrb[1].mxu1  ;;  %v868_v28 = vpop.f32.mrb[5].mxu0 }
 0x11f   : > { %v1248_v7 = vadd.f32 %v852_v25, %v503_v27  ;;  %v1222_v8 = vpop.f32.mrb[2].mxu1  ;;  %v1246_v50 = vpop.f32.mrb[6].mxu0 }
 0x120   : > { %v900_v2 = vadd.f32 %v1247_v26, %v1141_v31  ;;  %v1249_v29 = vadd.f32 %v1242_v22, %v1222_v8  ;;  %v506_v30 = vpop.f32.mrb[3].mxu1  ;;  %v871_v33 = vpop.f32.mrb[7].mxu0 }
 0x121   : > { %v898_v32 = vadd.f32 %v1248_v7, %v1141_v31  ;;  %v1250_v34 = vadd.f32 %v855_v56, %v506_v30 }
 0x122   : > { %v916_v35 = vmul.f32 0.2, %v900_v2  ;;  %v901_v36 = vadd.f32 %v1249_v29, %v1141_v31  ;;  %vm908_vm4 = vcmp.ge.f32.partialorder %v900_v2, 0.0 }
 0x123   : > { %v914_v37 = vmul.f32 0.2, %v898_v32  ;;  %v899_v38 = vadd.f32 %v1250_v34, %v1141_v31  ;;  %vm906_vm5 = vcmp.ge.f32.partialorder %v898_v32, 0.0 }
 0x124   : > { %vm909_vm6 = vcmp.ge.f32.partialorder %v901_v36, 0.0  ;;  %v917_v39 = vmul.f32 0.2, %v901_v36  ;;  %v924_v42 = vsel %vm908_vm4, %v900_v2, %v916_v35 }
 0x125   : > { %vm907_vm7 = vcmp.ge.f32.partialorder %v899_v38, 0.0  ;;  %v915_v40 = vmul.f32 0.2, %v899_v38  ;;  %v1225_v41 = vpop.f32.mrb[4].mxu1  ;;  %v922_v46 = vsel %vm906_vm5, %v898_v32, %v914_v37 }
 0x126   : > { %v925_v43 = vsel %vm909_vm6, %v901_v36, %v917_v39  ;;  %v1251_v44 = vadd.f32 %v1245_v23, %v1225_v41  ;;  %v519_v45 = vpop.f32.mrb[5].mxu1 }
 0x127   : > { %v1172_v47 = vpack.c.bf16 %v925_v43, %v924_v42  ;;  %v923_v48 = vsel %vm907_vm7, %v899_v38, %v915_v40  ;;  %v1252_v49 = vadd.f32 %v868_v28, %v519_v45  ;;  %v1226_v51 = vpop.f32.mrb[6].mxu1 }
 0x128   : > { %v1167_v52 = vpack.c.bf16 %v923_v48, %v922_v46  ;;  %v904_v53 = vadd.f32 %v1251_v44, %v1141_v31  ;;  %v1253_v54 = vadd.f32 %v1246_v50, %v1226_v51  ;;  %v522_v55 = vpop.f32.mrb[7].mxu1 }
 0x129   : > { %1184 = vst [vmem:[%s187_s26 + $0x8] sm:$0xff] %v1172_v47   ;;  %v902_v57 = vadd.f32 %v1252_v49, %v1141_v31  ;;  %v1254_v58 = vadd.f32 %v871_v33, %v522_v55 }
 0x12a   : > { %1168 = vst [vmem:[%s187_s26] sm:$0xff] %v1167_v52   ;;  %v920_v59 = vmul.f32 0.2, %v904_v53  ;;  %v905_v60 = vadd.f32 %v1253_v54, %v1141_v31  ;;  %vm912_vm8 = vcmp.ge.f32.partialorder %v904_v53, 0.0 }
 0x12b   : > { %v918_v61 = vmul.f32 0.2, %v902_v57  ;;  %v903_v62 = vadd.f32 %v1254_v58, %v1141_v31  ;;  %vm910_vm9 = vcmp.ge.f32.partialorder %v902_v57, 0.0 }
 0x12c   : > { %vm913_vm10 = vcmp.ge.f32.partialorder %v905_v60, 0.0  ;;  %v921_v63 = vmul.f32 0.2, %v905_v60  ;;  %v928_v1 = vsel %vm912_vm8, %v904_v53, %v920_v59 }
 0x12d   : > { %vm911_vm11 = vcmp.ge.f32.partialorder %v903_v62, 0.0  ;;  %v919_v0 = vmul.f32 0.2, %v903_v62  ;;  %v926_v4 = vsel %vm910_vm9, %v902_v57, %v918_v61 }
 0x12e   : > { %v929_v3 = vsel %vm913_vm10, %v905_v60, %v921_v63 }
 0x12f   : > { %v1182_v5 = vpack.c.bf16 %v929_v3, %v928_v1  ;;  %v927_v9 = vsel %vm911_vm11, %v903_v62, %v919_v0 }
 0x130   : > { %v1177_v10 = vpack.c.bf16 %v927_v9, %v926_v4 }
 0x131   : > { %1186 = vst [vmem:[%s187_s26 + $0x18] sm:$0xff] %v1182_v5  }
 0x132   : > { %1185 = vst [vmem:[%s187_s26 + $0x10] sm:$0xff] %v1177_v10  }
 0x133   : > { %1354 = shalt.err (!%p1351_p5)
}
 0x134   : > { %s1355_s9 = scalar_lea.hbm %s1662_s4, 512  ;;  %s1359_s18 = scalar_lea.hbm %s1717_s3, 1024 }
 0x135   : > { %p1356_p6 = scmp.ne.s32.totalorder %s1662_s4, %s1355_s9  ;;  %p1360_p10 = scmp.lt.u32.totalorder %s1662_s4, %s1717_s3 }
 0x136   : > { %p1361_p11 = scmp.lt.u32.totalorder %s1359_s18, %s1355_s9  ;;  %p1363_p13 = scmp.lt.u32.totalorder %s1355_s9, %s1662_s4 }
 0x137   : > { %p1357_p7 = pnand %p1356_p6, %p1484_p4 }
 0x138   : > { %p1362_p12 = por %p1361_p11, %p1360_p10 }
 0x139   : > { %p1358_p9 = pneg %p1357_p7 }
 0x13a   : > { %p1364_p0 = por %p1363_p13, %p1362_p12 }
 0x13c   : > { %p1365_p1 = pnand %p1364_p0, %p1358_p9 }
 0x13e   : > { %1368 = shalt.err (!%p1365_p1)
}
 0x13f   : > { %s1422_s23 = smov 64   ;;  %s1423_s26 = smov 4  }
 0x140   : > { %1272 = dma.vmem_to_hbm [thread:$0]  (%p1484_p4), %s1664_s28, 512, %s1662_s4, %s1668_s15, %s1422_s23, %s1422_s23, %s1423_s26  }
 0x141 PF: > { %p1278_p2 = scmp.ge.s32.totalorder %s1419_s17, 2  ;;  %s1001_s27 = sand.u32 1, %s1399_s12  }
 0x142   : > { %s1002_s29 = scalar_lea.sflag [#allocation3], %s1001_s27 }
 0x143   : > { %p1275_p3 = pnand %p1278_p2, %p1491_p8 }
 0x145   : > { %1394 = dma.done.wait (!%p1275_p3), %s1002_s29, 512  }
 0x146   : > { %1396 = vsyncadd (!%p1275_p3), %s1002_s29, 4294966784  ;;  %s16_s17 = sadd.s32 1, %s1419_s17   ;;  %s1722_s12 = smov %s1403_s13 }
 0x147   : > { %p13_p5 = scmp.ge.s32.totalorder %s16_s17, 4   ;;  %s1723_s13 = smov %s1407_s14 }
 0x148   : > { %s1724_s14 = smov %s1497_s25  ;;  %s1725_s15 = smov %s1415_s16 }
 0x149   : > { %s1726_s16 = smov %s1728_s20  ;;  %15 = sbr.rel (!%p13_p5) target bundleno = 4 (0x4), region = 71 }
 0x150   :  { %1007 = vsyncpa [#allocation3], 1 }
 0x151   :  { %1009 = vsyncpa [#allocation3 + $0x1], 1 }

</bundles_post_ra>
